<compile_context>
chip_gen: v7x
topology: tpu7x:2x2x1
jax: 0.10.0
libtpu: 0.0.40
codegen_flags: <defaults>
</compile_context>

<pallas_src>
import math
import jax
import jax.numpy as jnp
from jax.experimental import pallas as pl
from jax.experimental.pallas import tpu as pltpu


_SQRT_2_OVER_PI = math.sqrt(2.0 / math.pi)


def _gelu_tanh(x):
    # tanh-approximate GELU: runs on the EUP slot instead of a ~15-20 op erf
    # VALU polynomial.  Max deviation from exact erf-GELU ~3e-3, inside the
    # bf16-MXU tolerance used below.
    return 0.5 * x * (1.0 + jnp.tanh(_SQRT_2_OVER_PI * (x + 0.044715 * (x * x * x))))


def _gelu_exact(x):
    # erf-based GELU (PyTorch F.gelu default) - used only for the reference.
    return 0.5 * x * (1.0 + jax.lax.erf(x * (1.0 / math.sqrt(2.0))))


def _round_up(a, b):
    return (a + b - 1) // b * b


# ---------------------------------------------------------------------------
# Kernels
# ---------------------------------------------------------------------------
def _mlp_kernel_resident(x_ref, w1_ref, b1_ref, w2_ref, b2_ref, o_ref):
    # Weights fully resident in VMEM (constant index_map -> fetched once).
    # Grid: (M tiles,) only.
    x = x_ref[...].astype(jnp.bfloat16)                       # (tm, C) bf16 -> MXU
    h = jnp.dot(x, w1_ref[...], preferred_element_type=jnp.float32)
    h = _gelu_tanh(h + b1_ref[...])                           # f32 bias + gelu
    y = jnp.dot(h.astype(jnp.bfloat16), w2_ref[...],
                preferred_element_type=jnp.float32)           # (tm, C) f32
    o_ref[...] = (y + b2_ref[...]).astype(o_ref.dtype)


def _mlp_kernel_streamed(x_ref, w1_ref, b1_ref, w2_ref, b2_ref, o_ref, acc_ref):
    # Grid: (M tiles [parallel], H tiles [arbitrary reduction, innermost]).
    h_idx = pl.program_id(1)

    x = x_ref[...].astype(jnp.bfloat16)                       # (tm, C) bf16 -> MXU
    h = jnp.dot(x, w1_ref[...], preferred_element_type=jnp.float32)   # (tm, th)
    h = _gelu_tanh(h + b1_ref[...])
    part = jnp.dot(h.astype(jnp.bfloat16), w2_ref[...],
                   preferred_element_type=jnp.float32)        # (tm, C) partial

    @pl.when(h_idx == 0)
    def _():
        acc_ref[...] = part          # direct store: no zero-init + add on step 0

    @pl.when(h_idx != 0)
    def _():
        acc_ref[...] += part

    @pl.when(h_idx == pl.num_programs(1) - 1)
    def _():
        o_ref[...] = (acc_ref[...] + b2_ref[...]).astype(o_ref.dtype)


# ---------------------------------------------------------------------------
# Wrapper
# ---------------------------------------------------------------------------
def mlp_pallas(x, w1, b1, w2, b2, *, tm=None, th=512, force_streamed=False):
    """x: (B, T, C). w1: (C, 4C), b1: (4C,), w2: (4C, C), b2: (C,)."""
    B, T, C = x.shape
    Ci, H = w1.shape
    assert Ci == C and w2.shape == (H, C) and b1.shape == (H,) and b2.shape == (C,)
    # TODO(synk): pad C/H when not lane-aligned; all GPT configs here satisfy this.
    assert C % 128 == 0 and H % 128 == 0
    M = B * T

    x_bytes = jnp.dtype(x.dtype).itemsize
    out_bytes = x_bytes

    # VMEM budget: physical capacity minus ~12 MiB headroom for Mosaic internal
    # scratch (critical on v7x's 64 MiB per-TC VMEM); cap ~110 MiB on 128 MiB parts.
    try:
        vmem_cap = pltpu.get_tpu_info().vmem_capacity_bytes
    except Exception:
        vmem_cap = 64 << 20
    budget = max(min(vmem_cap - (12 << 20), 110 << 20), 24 << 20)

    # Roofline-sized row tile (per-step arithmetic intensity ~ tm FLOP/byte of
    # streamed weights): 1024 on 128-MiB-VMEM parts (v5e/v6e), 512 on v7x.
    if tm is None:
        tm = 1024 if vmem_cap >= (100 << 20) else 512

    # H tile for the streamed path: largest multiple of 128 <= th dividing H.
    th_eff = min(_round_up(th, 128), H)
    while H % th_eff:
        th_eff -= 128

    def resident_bytes(tm_):
        return (2 * tm_ * C * x_bytes            # x tiles (double-buffered)
                + 2 * (C * H + H * C) * 2        # w1 + w2 bf16 (conservative: 2 bufs)
                + 2 * (H + C) * 4                # biases
                + 2 * tm_ * C * out_bytes        # out tiles
                + tm_ * H * (4 + 2))             # (tm, H) f32 intermediate + bf16 copy

    def streamed_bytes(tm_):
        return (2 * tm_ * C * x_bytes
                + 2 * (C * th_eff + th_eff * C) * 2   # streamed w1/w2 slices
                + 2 * (th_eff + C) * 4
                + 2 * tm_ * C * out_bytes
                + tm_ * C * 4                          # f32 accumulator scratch
                + tm_ * th_eff * (4 + 2))              # (tm, th) intermediate

    # --- choose row tile per path (no ">=2 steps" clamp; MXU-sized floor) ---
    if M <= tm:
        tm_res = tm_str = _round_up(max(M, 8), 8)     # single full-width tile
    else:
        tm_res = _round_up(tm, 256)
        while tm_res > 256 and resident_bytes(tm_res) > budget:
            tm_res //= 2
        tm_str = _round_up(tm, 256)
        while tm_str > 256 and streamed_bytes(tm_str) > budget:
            tm_str //= 2

    use_resident = (not force_streamed) and (resident_bytes(tm_res) <= budget)
    tm_eff = tm_res if use_resident else tm_str

    Mp = _round_up(M, tm_eff)
    x2 = x.reshape(M, C)
    if Mp != M:
        # TODO(synk): handle the ragged last M tile in-kernel to avoid this pad copy.
        x2 = jnp.pad(x2, ((0, Mp - M), (0, 0)))

    # bf16 MXU operands (halves weight DMA/VMEM); accumulation stays f32 in-kernel.
    w1c = w1.astype(jnp.bfloat16)
    w2c = w2.astype(jnp.bfloat16)
    b1_2 = b1.reshape(1, H).astype(jnp.float32)
    b2_2 = b2.reshape(1, C).astype(jnp.float32)

    if use_resident:
        vmem_limit = int(min(budget, resident_bytes(tm_eff) + (8 << 20)))
        out = pl.pallas_call(
            _mlp_kernel_resident,
            out_shape=jax.ShapeDtypeStruct((Mp, C), x.dtype),
            grid_spec=pltpu.PrefetchScalarGridSpec(
                num_scalar_prefetch=0,
                grid=(Mp // tm_eff,),
                in_specs=[
                    pl.BlockSpec((tm_eff, C), lambda i: (i, 0)),   # x rows
                    pl.BlockSpec((C, H), lambda i: (0, 0)),        # w1 (resident)
                    pl.BlockSpec((1, H), lambda i: (0, 0)),        # b1
                    pl.BlockSpec((H, C), lambda i: (0, 0)),        # w2 (resident)
                    pl.BlockSpec((1, C), lambda i: (0, 0)),        # b2
                ],
                out_specs=pl.BlockSpec((tm_eff, C), lambda i: (i, 0)),
            ),
            compiler_params=pltpu.CompilerParams(
                dimension_semantics=("parallel",),
                vmem_limit_bytes=vmem_limit,
            ),
        )(x2, w1c, b1_2, w2c, b2_2)
    else:
        vmem_limit = int(min(budget, streamed_bytes(tm_eff) + (8 << 20)))
        out = pl.pallas_call(
            _mlp_kernel_streamed,
            out_shape=jax.ShapeDtypeStruct((Mp, C), x.dtype),
            grid_spec=pltpu.PrefetchScalarGridSpec(
                num_scalar_prefetch=0,
                grid=(Mp // tm_eff, H // th_eff),
                in_specs=[
                    pl.BlockSpec((tm_eff, C), lambda i, h: (i, 0)),   # x rows (resident over h)
                    pl.BlockSpec((C, th_eff), lambda i, h: (0, h)),   # w1 slice (streamed)
                    pl.BlockSpec((1, th_eff), lambda i, h: (0, h)),   # b1 slice
                    pl.BlockSpec((th_eff, C), lambda i, h: (h, 0)),   # w2 slice (streamed)
                    pl.BlockSpec((1, C), lambda i, h: (0, 0)),        # b2 (tiny, constant)
                ],
                out_specs=pl.BlockSpec((tm_eff, C), lambda i, h: (i, 0)),
                scratch_shapes=[pltpu.VMEM((tm_eff, C), jnp.float32)],
            ),
            compiler_params=pltpu.CompilerParams(
                dimension_semantics=("parallel", "arbitrary"),
                vmem_limit_bytes=vmem_limit,
            ),
        )(x2, w1c, b1_2, w2c, b2_2)

    if Mp != M:
        out = out[:M]
    return out.reshape(B, T, C)


# ---------------------------------------------------------------------------
# Reference + demo
# ---------------------------------------------------------------------------
def _init_linear(key, fan_in, fan_out, dtype=jnp.float32):
    # Deterministic init mimicking nn.Linear: U(-1/sqrt(fan_in), 1/sqrt(fan_in)).
    kw, kb = jax.random.split(key)
    bound = 1.0 / math.sqrt(fan_in)
    w = jax.random.uniform(kw, (fan_in, fan_out), dtype, -bound, bound)
    b = jax.random.uniform(kb, (fan_out,), dtype, -bound, bound)
    return w, b


def _mlp_reference(x, w1, b1, w2, b2):
    h = _gelu_exact(jnp.einsum("btc,ch->bth", x, w1) + b1)
    return jnp.einsum("bth,hc->btc", h, w2) + b2


if __name__ == "__main__":
    # ModelConfig: n_embd = 256 -> hidden = 4 * n_embd = 1024
    B, T, C = 2, 8, 256
    H = 4 * C

    key = jax.random.PRNGKey(0)
    kx, k1, k2 = jax.random.split(key, 3)

    x = jax.random.normal(kx, (B, T, C), jnp.float32)
    w1, b1 = _init_linear(k1, C, H)
    w2, b2 = _init_linear(k2, H, C)

    y_ref = _mlp_reference(x, w1, b1, w2, b2)

    # Weights-resident fast path (selected automatically for this config).
    y = jax.block_until_ready(mlp_pallas(x, w1, b1, w2, b2))
    assert y.shape == (B, T, C)
    # bf16 MXU operands + tanh-approx GELU vs f32 erf reference -> relaxed tol.
    assert jnp.allclose(y, y_ref, atol=3e-2, rtol=3e-2), "resident path mismatch"

    # Also exercise the streamed-H reduction path.
    y_s = jax.block_until_ready(mlp_pallas(x, w1, b1, w2, b2, force_streamed=True))
    assert jnp.allclose(y_s, y_ref, atol=3e-2, rtol=3e-2), "streamed path mismatch"

    print("KERNEL_OK")
</pallas_src>

<mosaic_0001>
module attributes {stable_mosaic.version = 11 : i64} {
  func.func @_mlp_kernel_resident(%arg0: i32, %arg1: memref<16x256xf32, #tpu.memory_space<vmem>>, %arg2: memref<256x1024xbf16, #tpu.memory_space<vmem>>, %arg3: memref<1x1024xf32, #tpu.memory_space<vmem>>, %arg4: memref<1024x256xbf16, #tpu.memory_space<vmem>>, %arg5: memref<1x256xf32, #tpu.memory_space<vmem>>, %arg6: memref<16x256xf32, #tpu.memory_space<vmem>>) attributes {dimension_semantics = [#tpu.dimension_semantics<parallel>], iteration_bounds = array<i64: 1>, scalar_prefetch = 0 : i64, scratch_operands = 0 : i64, tpu.core_type = #tpu.core_type<tc>, window_params = [{transform_indices = @transform_0, window_bounds = array<i64: 16, 256>}, {pipeline_mode = #tpu.pipeline_mode<synchronous>, transform_indices = @transform_1, window_bounds = array<i64: 256, 1024>}, {pipeline_mode = #tpu.pipeline_mode<synchronous>, transform_indices = @transform_2, window_bounds = array<i64: 1, 1024>}, {pipeline_mode = #tpu.pipeline_mode<synchronous>, transform_indices = @transform_3, window_bounds = array<i64: 1024, 256>}, {pipeline_mode = #tpu.pipeline_mode<synchronous>, transform_indices = @transform_4, window_bounds = array<i64: 1, 256>}, {transform_indices = @transform_5, window_bounds = array<i64: 16, 256>}]} {
    %c0 = arith.constant 0 : index
    %c0_0 = arith.constant 0 : index
    %0 = vector.load %arg1[%c0, %c0_0] : memref<16x256xf32, #tpu.memory_space<vmem>>, vector<16x256xf32>
    %1 = arith.truncf %0 : vector<16x256xf32> to vector<16x256xbf16>
    %c0_1 = arith.constant 0 : index
    %c0_2 = arith.constant 0 : index
    %2 = vector.load %arg2[%c0_1, %c0_2] : memref<256x1024xbf16, #tpu.memory_space<vmem>>, vector<256x1024xbf16>
    %cst = arith.constant dense<0.000000e+00> : vector<16x1024xf32>
    %3 = tpu.matmul %1, %2, %cst {dimension_numbers = #tpu.dot_dimension_numbers<[1], [0], [0], [1], [0, 0, 1, 1], [], []>} : vector<16x256xbf16>, vector<256x1024xbf16>, vector<16x1024xf32> -> vector<16x1024xf32>
    %c0_3 = arith.constant 0 : index
    %c0_4 = arith.constant 0 : index
    %4 = vector.load %arg3[%c0_3, %c0_4] : memref<1x1024xf32, #tpu.memory_space<vmem>>, vector<1x1024xf32>
    %5 = vector.broadcast %4 : vector<1x1024xf32> to vector<16x1024xf32>
    %6 = arith.addf %3, %5 : vector<16x1024xf32>
    %cst_5 = arith.constant 5.000000e-01 : f32
    %7 = vector.broadcast %cst_5 : f32 to vector<16x1024xf32>
    %8 = arith.mulf %7, %6 : vector<16x1024xf32>
    %9 = arith.mulf %6, %6 : vector<16x1024xf32>
    %10 = arith.mulf %9, %6 : vector<16x1024xf32>
    %cst_6 = arith.constant 4.471500e-02 : f32
    %11 = vector.broadcast %cst_6 : f32 to vector<16x1024xf32>
    %12 = arith.mulf %11, %10 : vector<16x1024xf32>
    %13 = arith.addf %6, %12 : vector<16x1024xf32>
    %cst_7 = arith.constant 0.797884583 : f32
    %14 = vector.broadcast %cst_7 : f32 to vector<16x1024xf32>
    %15 = arith.mulf %14, %13 : vector<16x1024xf32>
    %16 = math.tanh %15 : vector<16x1024xf32>
    %cst_8 = arith.constant 1.000000e+00 : f32
    %17 = vector.broadcast %cst_8 : f32 to vector<16x1024xf32>
    %18 = arith.addf %17, %16 : vector<16x1024xf32>
    %19 = arith.mulf %8, %18 : vector<16x1024xf32>
    %20 = arith.truncf %19 : vector<16x1024xf32> to vector<16x1024xbf16>
    %c0_9 = arith.constant 0 : index
    %c0_10 = arith.constant 0 : index
    %21 = vector.load %arg4[%c0_9, %c0_10] : memref<1024x256xbf16, #tpu.memory_space<vmem>>, vector<1024x256xbf16>
    %cst_11 = arith.constant dense<0.000000e+00> : vector<16x256xf32>
    %22 = tpu.matmul %20, %21, %cst_11 {dimension_numbers = #tpu.dot_dimension_numbers<[1], [0], [0], [1], [0, 0, 1, 1], [], []>} : vector<16x1024xbf16>, vector<1024x256xbf16>, vector<16x256xf32> -> vector<16x256xf32>
    %c0_12 = arith.constant 0 : index
    %c0_13 = arith.constant 0 : index
    %23 = vector.load %arg5[%c0_12, %c0_13] : memref<1x256xf32, #tpu.memory_space<vmem>>, vector<1x256xf32>
    %24 = vector.broadcast %23 : vector<1x256xf32> to vector<16x256xf32>
    %25 = arith.addf %22, %24 : vector<16x256xf32>
    %c0_14 = arith.constant 0 : index
    %c0_15 = arith.constant 0 : index
    %26 = vector.load %arg6[%c0_14, %c0_15] : memref<16x256xf32, #tpu.memory_space<vmem>>, vector<16x256xf32>
    tpu.vector_store %arg6[%c0_14, %c0_15], %25 {strides = array<i32>} : memref<16x256xf32, #tpu.memory_space<vmem>>, vector<16x256xf32>,
    return
  }
  func.func @transform_0(%arg0: i32) -> (i32, i32) {
    %c0_i32 = arith.constant 0 : i32
    %c0_i32_0 = arith.constant 0 : i32
    return %arg0, %c0_i32 : i32, i32
  }
  func.func @transform_1(%arg0: i32) -> (i32, i32) {
    %c0_i32 = arith.constant 0 : i32
    %c0_i32_0 = arith.constant 0 : i32
    %c0_i32_1 = arith.constant 0 : i32
    return %c0_i32, %c0_i32_0 : i32, i32
  }
  func.func @transform_2(%arg0: i32) -> (i32, i32) {
    %c0_i32 = arith.constant 0 : i32
    %c0_i32_0 = arith.constant 0 : i32
    %c0_i32_1 = arith.constant 0 : i32
    return %c0_i32, %c0_i32_0 : i32, i32
  }
  func.func @transform_3(%arg0: i32) -> (i32, i32) {
    %c0_i32 = arith.constant 0 : i32
    %c0_i32_0 = arith.constant 0 : i32
    %c0_i32_1 = arith.constant 0 : i32
    return %c0_i32, %c0_i32_0 : i32, i32
  }
  func.func @transform_4(%arg0: i32) -> (i32, i32) {
    %c0_i32 = arith.constant 0 : i32
    %c0_i32_0 = arith.constant 0 : i32
    %c0_i32_1 = arith.constant 0 : i32
    return %c0_i32, %c0_i32_0 : i32, i32
  }
  func.func @transform_5(%arg0: i32) -> (i32, i32) {
    %c0_i32 = arith.constant 0 : i32
    %c0_i32_0 = arith.constant 0 : i32
    return %arg0, %c0_i32 : i32, i32
  }
}

</mosaic_0001>

<bundles_post_ra>
// kernel: tpu_custom_call.1
= control target key start
LH: loop header
LB: loop body
LE: loop exit
PB: predicated region body
PF: predicated region fallthrough
CT: control target
= control target key end

     0   :  { %10 = vsyncpa [#allocation3], 0  ;;  %s2992_s0 = inlined_call_operand.hbm [shape: f32[16,256], index: 0, kind: input, shape index: {}]   ;;  %s2993_s1 = inlined_call_operand.hbm [shape: bf16[256,1024], index: 1, kind: input, shape index: {}]   ;;  %s2994_s2 = inlined_call_operand.hbm [shape: f32[1,1024], index: 2, kind: input, shape index: {}]   ;;  %s2995_s3 = inlined_call_operand.hbm [shape: bf16[1024,256], index: 3, kind: input, shape index: {}]   ;;  %s2996_s4 = inlined_call_operand.vmem [shape: f32[1,256], index: 4, kind: input, shape index: {}]   ;;  %s2997_s5 = inlined_call_operand.hbm [shape: f32[16,256], index: 5, kind: output, shape index: {}]  }
   0x1   :  { %11 = vsyncpa [#allocation6], 0 }
   0x2   :  { %12 = vsyncpa [#allocation9], 0 }
   0x3   :  { %13 = vsyncpa [#allocation4], 0  ;;  %s2814_s18 = smov [#allocation5]   ;;  %s2696_s22 = scalar_lea.hbm %s2993_s1, 16384 }
   0x4   :  { %s31_s19 = sshll.u32 %s2814_s18, 4  ;;  %p2697_p0 = scmp.ne.s32.totalorder %s2993_s1, %s2696_s22  ;;  %s32_s19 = int_to_ptr.vmem [resolvable:$true] %s31_s19 }
   0x5   :  { %p2700_p1 = scmp.lt.u32.totalorder %s2696_s22, %s2993_s1 }
   0x7   :  { %p2702_p2 = pnand %p2700_p1, %p2697_p0 }
   0x9   :  { %2705 = shalt.err (!%p2702_p2)
}
   0xa   :  { %s2706_s27 = scalar_lea.vmem %s32_s19, 16384  ;;  %p2711_p4 = scmp.lt.s32.totalorder %s32_s19, %s32_s19 }
   0xb   :  { %p2707_p3 = scmp.ne.s32.totalorder %s32_s19, %s2706_s27  ;;  %p2712_p5 = scmp.lt.s32.totalorder %s2706_s27, %s2706_s27 }
   0xd   :  { %p2713_p6 = por %p2712_p5, %p2711_p4 }
   0xf   :  { %p2714_p7 = pnand %p2713_p6, %p2707_p3 }
  0x11   :  { %2717 = shalt.err (!%p2714_p7)
}
  0x12   :  { %s2815_s28 = smov 512   ;;  %s2816_s29 = smov 32  }
  0x13   :  { %37 = dma.hbm_to_vmem [thread:$0]  %s2993_s1, 16384, %s32_s19, [#allocation6], %s2815_s28, %s2815_s28, %s2816_s29  }
  0x14   :  { %s2817_s7 = smov [#allocation2]   ;;  %s2718_s11 = scalar_lea.hbm %s2992_s0, 512 }
  0x15   :  { %s19_s8 = sshll.u32 %s2817_s7, 4  ;;  %p2719_p8 = scmp.ne.s32.totalorder %s2992_s0, %s2718_s11  ;;  %s20_s8 = int_to_ptr.vmem [resolvable:$true] %s19_s8 }
  0x16   :  { %p2722_p9 = scmp.lt.u32.totalorder %s2718_s11, %s2992_s0 }
  0x18   :  { %p2724_p10 = pnand %p2722_p9, %p2719_p8 }
  0x1a   :  { %2727 = shalt.err (!%p2724_p10)
}
  0x1b   :  { %s2728_s16 = scalar_lea.vmem %s20_s8, 512  ;;  %p2733_p12 = scmp.lt.s32.totalorder %s20_s8, %s20_s8 }
  0x1c   :  { %p2729_p11 = scmp.ne.s32.totalorder %s20_s8, %s2728_s16  ;;  %p2734_p13 = scmp.lt.s32.totalorder %s2728_s16, %s2728_s16 }
  0x1e   :  { %p2735_p0 = por %p2734_p13, %p2733_p12 }
  0x20   :  { %p2736_p1 = pnand %p2735_p0, %p2729_p11 }
  0x22   :  { %2739 = shalt.err (!%p2736_p1)
}
  0x23   :  { %s2818_s1 = smov 256   ;;  %s2819_s17 = smov 16  }
  0x24   :  { %25 = dma.hbm_to_vmem [thread:$0]  %s2992_s0, 512, %s20_s8, [#allocation3], %s2818_s1, %s2818_s1, %s2819_s17  }
  0x25   :  { %s2820_s20 = smov [#allocation7]   ;;  %s2821_s22 = smov [#allocation8]  }
  0x26   :  { %s44_s21 = sshll.u32 %s2820_s20, 4  ;;  %s53_s23 = sshll.u32 %s2821_s22, 4  ;;  %s45_s21 = int_to_ptr.vmem [resolvable:$true] %s44_s21  ;;  %s2882_s23 = int_to_ptr.vmem [resolvable:$true] %s53_s23 }
  0x27   :  { %s2740_s26 = scalar_lea.hbm %s2994_s2, 128 }
  0x28   :  { %p2741_p2 = scmp.ne.s32.totalorder %s2994_s2, %s2740_s26  ;;  %p2744_p3 = scmp.lt.u32.totalorder %s2740_s26, %s2994_s2 }
  0x2a   :  { %p2746_p4 = pnand %p2744_p3, %p2741_p2 }
  0x2c   :  { %2749 = shalt.err (!%p2746_p4)
}
  0x2d   :  { %s2750_s0 = scalar_lea.vmem %s45_s21, 128  ;;  %p2755_p6 = scmp.lt.s32.totalorder %s45_s21, %s45_s21 }
  0x2e   :  { %p2751_p5 = scmp.ne.s32.totalorder %s45_s21, %s2750_s0  ;;  %p2756_p7 = scmp.lt.s32.totalorder %s2750_s0, %s2750_s0 }
  0x30   :  { %p2757_p8 = por %p2756_p7, %p2755_p6 }
  0x32   :  { %p2758_p9 = pnand %p2757_p8, %p2751_p5 }
  0x34   :  { %2761 = shalt.err (!%p2758_p9)
}
  0x35   :  { %47 = dma.hbm_to_vmem [thread:$0]  %s2994_s2, 128, %s45_s21, [#allocation6]  }
  0x36   :  { %s2762_s10 = scalar_lea.hbm %s2995_s3, 16384 }
  0x37   :  { %p2763_p10 = scmp.ne.s32.totalorder %s2995_s3, %s2762_s10  ;;  %p2766_p11 = scmp.lt.u32.totalorder %s2762_s10, %s2995_s3 }
  0x39   :  { %p2768_p12 = pnand %p2766_p11, %p2763_p10 }
  0x3b   :  { %2771 = shalt.err (!%p2768_p12)
}
  0x3c   :  { %s2772_s15 = scalar_lea.vmem %s2882_s23, 16384  ;;  %p2777_p0 = scmp.lt.s32.totalorder %s2882_s23, %s2882_s23 }
  0x3d   :  { %p2773_p13 = scmp.ne.s32.totalorder %s2882_s23, %s2772_s15  ;;  %p2778_p1 = scmp.lt.s32.totalorder %s2772_s15, %s2772_s15 }
  0x3f   :  { %p2779_p2 = por %p2778_p1, %p2777_p0 }
  0x41   :  { %p2780_p3 = pnand %p2779_p2, %p2773_p13 }
  0x43   :  { %2783 = shalt.err (!%p2780_p3)
}
  0x44   :  { %s2822_s2 = smov 128   ;;  %s2823_s16 = smov 8  }
  0x45   :  { %59 = dma.hbm_to_vmem [thread:$0]  %s2995_s3, 16384, %s2882_s23, [#allocation9], %s2822_s2, %s2822_s2, %s2823_s16  }
  0x46   :  { %2806 = dma.done.wait [#allocation3], 512  }
  0x47   :  { %2807 = vsyncadd [#allocation3], 4294966784 }
  0x48   :  { %2808 = dma.done.wait [#allocation6], 16512  }
  0x49   :  { %2809 = vsyncadd [#allocation6], 4294950784 }
  0x4a   :  { %2810 = dma.done.wait [#allocation9], 16384  }
  0x4b   :  { %2811 = vsyncadd [#allocation9], 4294950912  ;;  %v80_v0 = vld [vmem:[#allocation5] sm:$0xff]  ;;  %v75_v17 = vld [vmem:[#allocation2 + $0x8] sm:$0xff]  ;;  %s2824_s21 = smov [#allocation10]  }
  0x4c   :  { %v84_v1 = vld [vmem:[#allocation5 + $0x20] sm:$0xff]  ;;  %v77_v18 = vld [vmem:[#allocation2 + $0x18] sm:$0xff]  ;;  %s2175_s22 = sshll.u32 %s2824_s21, 4  ;;  %s2176_s22 = int_to_ptr.vmem [resolvable:$true] %s2175_s22 }
  0x4d   :  { %v88_v2 = vld [vmem:[#allocation5 + $0x40] sm:$0xff]  ;;  %v2190_v3 = vcombine.high %v80_v0, %v84_v1  ;;  %v2189_v4 = vcombine.low %v80_v0, %v84_v1  ;;  %v2913_v20 = vpack.c.bf16 %v77_v18, %v75_v17  ;;  %v81_v1 = vld [vmem:[#allocation5 + $0x8] sm:$0xff]  ;;  %p2789_p5 = scmp.lt.s32.totalorder %s2176_s22, %s2176_s22 }
  0x4e   :  { %v92_v5 = vld [vmem:[#allocation5 + $0x60] sm:$0xff]  ;;  %v109_v17 = vld [vmem:[#allocation5 + $0xe8] sm:$0xff] }
  0x4f   :  { %v2198_v6 = vcombine.high %v88_v2, %v92_v5  ;;  %v96_v7 = vld [vmem:[#allocation5 + $0x80] sm:$0xff]  ;;  %890 = vmatprep.subr.bf16.mxu1 %v2190_v3  ;;  %v2197_v9 = vcombine.low %v88_v2, %v92_v5  ;;  %922 = vmatprep.mubr.bf16.mxu1 %v2913_v20  ;;  %v85_v2 = vld [vmem:[#allocation5 + $0x28] sm:$0xff]  ;;  %v76_v5 = vld [vmem:[#allocation2 + $0x10] sm:$0xff] }
  0x50   :  { %v100_v8 = vld [vmem:[#allocation5 + $0xa0] sm:$0xff]  ;;  %891 = vmatpush1.bf16.msra.mxu1 %v2189_v4 }
  0x51   :  { %892 = vmatprep.subr.bf16.mxu1 %v2198_v6  ;;  %v2206_v10 = vcombine.high %v96_v7, %v100_v8  ;;  %v104_v11 = vld [vmem:[#allocation5 + $0xc0] sm:$0xff]  ;;  %v2205_v13 = vcombine.low %v96_v7, %v100_v8  ;;  %v89_v7 = vld [vmem:[#allocation5 + $0x48] sm:$0xff] }
  0x52   :  { %v108_v12 = vld [vmem:[#allocation5 + $0xe0] sm:$0xff]  ;;  %v93_v8 = vld [vmem:[#allocation5 + $0x68] sm:$0xff] }
  0x53   :  { %v2214_v14 = vcombine.high %v104_v11, %v108_v12  ;;  %v112_v15 = vld [vmem:[#allocation5 + $0x100] sm:$0xff]  ;;  %v2213_v19 = vcombine.low %v104_v11, %v108_v12  ;;  %v2191_v11 = vcombine.low %v81_v1, %v85_v2  ;;  %v97_v12 = vld [vmem:[#allocation5 + $0x88] sm:$0xff] }
  0x54   :  { %893 = vmatpush1.bf16.msra.mxu1 %v2197_v9  ;;  %v116_v16 = vld [vmem:[#allocation5 + $0x120] sm:$0xff]  ;;  %v2192_v9 = vcombine.high %v81_v1, %v85_v2  ;;  %v201_v2 = vld [vmem:[#allocation5 + $0x3c8] sm:$0xff] }
  0x55   :  { %894 = vmatprep.subr.bf16.mxu1 %v2206_v10  ;;  %v2222_v21 = vcombine.high %v112_v15, %v116_v16  ;;  %v120_v22 = vld [vmem:[#allocation5 + $0x140] sm:$0xff]  ;;  %v2221_v24 = vcombine.low %v112_v15, %v116_v16  ;;  %v2199_v15 = vcombine.low %v89_v7, %v93_v8  ;;  %v105_v16 = vld [vmem:[#allocation5 + $0xc8] sm:$0xff] }
  0x56   :  { %v124_v23 = vld [vmem:[#allocation5 + $0x160] sm:$0xff] }
  0x57   :  { %v2230_v25 = vcombine.high %v120_v22, %v124_v23  ;;  %v128_v26 = vld [vmem:[#allocation5 + $0x180] sm:$0xff]  ;;  %v2229_v28 = vcombine.low %v120_v22, %v124_v23  ;;  %v117_v22 = vld [vmem:[#allocation5 + $0x128] sm:$0xff]  ;;  %v2216_v23 = vcombine.high %v105_v16, %v109_v17 }
  0x58   :  { %895 = vmatpush1.bf16.msra.mxu1 %v2205_v13  ;;  %v132_v27 = vld [vmem:[#allocation5 + $0x1a0] sm:$0xff]  ;;  %v101_v13 = vld [vmem:[#allocation5 + $0xa8] sm:$0xff] }
  0x59   :  { %896 = vmatprep.subr.bf16.mxu1 %v2214_v14  ;;  %v2238_v29 = vcombine.high %v128_v26, %v132_v27  ;;  %v136_v30 = vld [vmem:[#allocation5 + $0x1c0] sm:$0xff]  ;;  %v2237_v32 = vcombine.low %v128_v26, %v132_v27  ;;  %v2200_v14 = vcombine.high %v89_v7, %v93_v8  ;;  %v2208_v18 = vcombine.high %v97_v12, %v101_v13  ;;  %v125_v27 = vld [vmem:[#allocation5 + $0x168] sm:$0xff]  ;;  %v82_v8 = vld [vmem:[#allocation5 + $0x10] sm:$0xff] }
  0x5a   :  { %v140_v31 = vld [vmem:[#allocation5 + $0x1e0] sm:$0xff] }
  0x5b   :  { %v2246_v33 = vcombine.high %v136_v30, %v140_v31  ;;  %v144_v34 = vld [vmem:[#allocation5 + $0x200] sm:$0xff]  ;;  %v2245_v36 = vcombine.low %v136_v30, %v140_v31  ;;  %v129_v30 = vld [vmem:[#allocation5 + $0x188] sm:$0xff] }
  0x5c   :  { %897 = vmatpush1.bf16.msra.mxu1 %v2213_v19  ;;  %v148_v35 = vld [vmem:[#allocation5 + $0x220] sm:$0xff]  ;;  %v2207_v19 = vcombine.low %v97_v12, %v101_v13  ;;  %v133_v31 = vld [vmem:[#allocation5 + $0x1a8] sm:$0xff] }
  0x5d   :  { %898 = vmatprep.subr.bf16.mxu1 %v2222_v21  ;;  %v152_v37 = vld [vmem:[#allocation5 + $0x240] sm:$0xff]  ;;  %v2254_v39 = vcombine.high %v144_v34, %v148_v35  ;;  %v2253_v40 = vcombine.low %v144_v34, %v148_v35  ;;  %v113_v21 = vld [vmem:[#allocation5 + $0x108] sm:$0xff] }
  0x5e   :  { %v156_v38 = vld [vmem:[#allocation5 + $0x260] sm:$0xff]  ;;  %v2224_v26 = vcombine.high %v113_v21, %v117_v22  ;;  %v137_v34 = vld [vmem:[#allocation5 + $0x1c8] sm:$0xff] }
  0x5f   :  { %v160_v41 = vld [vmem:[#allocation5 + $0x280] sm:$0xff]  ;;  %v2262_v43 = vcombine.high %v152_v37, %v156_v38  ;;  %v2261_v44 = vcombine.low %v152_v37, %v156_v38  ;;  %v141_v35 = vld [vmem:[#allocation5 + $0x1e8] sm:$0xff] }
  0x60   :  { %899 = vmatpush1.bf16.msra.mxu1 %v2221_v24  ;;  %v164_v42 = vld [vmem:[#allocation5 + $0x2a0] sm:$0xff]  ;;  %v2215_v24 = vcombine.low %v105_v16, %v109_v17  ;;  %v2248_v37 = vcombine.high %v137_v34, %v141_v35  ;;  %v145_v38 = vld [vmem:[#allocation5 + $0x208] sm:$0xff]  ;;  %v94_v16 = vld [vmem:[#allocation5 + $0x70] sm:$0xff] }
  0x61   :  { %900 = vmatprep.subr.bf16.mxu1 %v2230_v25  ;;  %v168_v45 = vld [vmem:[#allocation5 + $0x2c0] sm:$0xff]  ;;  %v2270_v47 = vcombine.high %v160_v41, %v164_v42  ;;  %v2269_v48 = vcombine.low %v160_v41, %v164_v42  ;;  %v121_v25 = vld [vmem:[#allocation5 + $0x148] sm:$0xff] }
  0x62   :  { %v172_v46 = vld [vmem:[#allocation5 + $0x2e0] sm:$0xff]  ;;  %v153_v42 = vld [vmem:[#allocation5 + $0x248] sm:$0xff] }
  0x63   :  { %v176_v49 = vld [vmem:[#allocation5 + $0x300] sm:$0xff]  ;;  %v2278_v51 = vcombine.high %v168_v45, %v172_v46  ;;  %v2277_v52 = vcombine.low %v168_v45, %v172_v46  ;;  %v161_v46 = vld [vmem:[#allocation5 + $0x288] sm:$0xff] }
  0x64   :  { %901 = vmatpush1.bf16.msra.mxu1 %v2229_v28  ;;  %v180_v50 = vld [vmem:[#allocation5 + $0x320] sm:$0xff]  ;;  %v2223_v28 = vcombine.low %v113_v21, %v117_v22  ;;  %v2478_v17 = vld [vmem:[#allocation8 + $0x24] ss:$8 sps:$4 sm:$0xff]  }
  0x65   :  { %902 = vmatprep.subr.bf16.mxu1 %v2238_v29  ;;  %v184_v53 = vld [vmem:[#allocation5 + $0x340] sm:$0xff]  ;;  %v2286_v55 = vcombine.high %v176_v49, %v180_v50  ;;  %v2285_v56 = vcombine.low %v176_v49, %v180_v50  ;;  %v2232_v29 = vcombine.high %v121_v25, %v125_v27  ;;  %v169_v50 = vld [vmem:[#allocation5 + $0x2c8] sm:$0xff]  ;;  %v98_v22 = vld [vmem:[#allocation5 + $0x90] sm:$0xff] }
  0x66   :  { %v188_v54 = vld [vmem:[#allocation5 + $0x360] sm:$0xff] }
  0x67   :  { %v192_v57 = vld [vmem:[#allocation5 + $0x380] sm:$0xff]  ;;  %v2294_v59 = vcombine.high %v184_v53, %v188_v54  ;;  %v2293_v60 = vcombine.low %v184_v53, %v188_v54  ;;  %v177_v54 = vld [vmem:[#allocation5 + $0x308] sm:$0xff] }
  0x68   :  { %903 = vmatpush1.bf16.msra.mxu1 %v2237_v32  ;;  %v196_v58 = vld [vmem:[#allocation5 + $0x3a0] sm:$0xff]  ;;  %v2231_v32 = vcombine.low %v121_v25, %v125_v27 }
  0x69   :  { %904 = vmatprep.subr.bf16.mxu1 %v2246_v33  ;;  %v200_v61 = vld [vmem:[#allocation5 + $0x3c0] sm:$0xff]  ;;  %v2302_v63 = vcombine.high %v192_v57, %v196_v58  ;;  %v2301_v0 = vcombine.low %v192_v57, %v196_v58  ;;  %v2240_v33 = vcombine.high %v129_v30, %v133_v31  ;;  %v185_v58 = vld [vmem:[#allocation5 + $0x348] sm:$0xff] }
  0x6a   :  { %v204_v62 = vld [vmem:[#allocation5 + $0x3e0] sm:$0xff] }
  0x6b   :  { %v2310_v3 = vcombine.high %v200_v61, %v204_v62  ;;  %v74_v4 = vld [vmem:[#allocation2] sm:$0xff]  ;;  %v2309_v6 = vcombine.low %v200_v61, %v204_v62  ;;  %v193_v62 = vld [vmem:[#allocation5 + $0x388] sm:$0xff] }
  0x6c   :  { %905 = vmatpush1.bf16.msra.mxu1 %v2245_v36  ;;  %v2916_v10 = vpack.c.bf16 %v76_v5, %v74_v4  ;;  %v2239_v36 = vcombine.low %v129_v30, %v133_v31  ;;  %v2472_v4 = vld [vmem:[#allocation8 + $0x4] ss:$8 sps:$4 sm:$0xff]   ;;  %v2474_v5 = vld [vmem:[#allocation8] ss:$8 sps:$4 sm:$0xff]   ;;  %v2477_v12 = vld [vmem:[#allocation8 + $0x10] ss:$8 sps:$4 sm:$0xff]  }
  0x6d   :  { %906 = vmatprep.subr.bf16.mxu1 %v2254_v39  ;;  %v149_v39 = vld [vmem:[#allocation5 + $0x228] sm:$0xff]  ;;  %1994 = vmatprep.subr.bf16.mxu0 %v2472_v4  ;;  %v2483_v25 = vld [vmem:[#allocation8 + $0x30] ss:$8 sps:$4 sm:$0xff]   ;;  %v110_v30 = vld [vmem:[#allocation5 + $0xf0] sm:$0xff] }
  0x6e   :  { %v2256_v41 = vcombine.high %v145_v38, %v149_v39  ;;  %1995 = vmatpush1.bf16.msra.mxu0 %v2474_v5  ;;  %v2486_v31 = vld [vmem:[#allocation8 + $0x40] ss:$8 sps:$4 sm:$0xff]  }
  0x70   :  { %907 = vmatpush1.bf16.msra.mxu1 %v2253_v40  ;;  %v2247_v40 = vcombine.low %v137_v34, %v141_v35  ;;  %v114_v35 = vld [vmem:[#allocation5 + $0x110] sm:$0xff] }
  0x71   :  { %908 = vmatprep.subr.bf16.mxu1 %v2262_v43  ;;  %v157_v43 = vld [vmem:[#allocation5 + $0x268] sm:$0xff] }
  0x72   :  { %v2264_v45 = vcombine.high %v153_v42, %v157_v43 }
  0x74   :  { %909 = vmatpush1.bf16.msra.mxu1 %v2261_v44  ;;  %v2255_v44 = vcombine.low %v145_v38, %v149_v39  ;;  %v2490_v38 = vld [vmem:[#allocation8 + $0x64] ss:$8 sps:$4 sm:$0xff]  }
  0x75   :  { %910 = vmatprep.subr.bf16.mxu1 %v2270_v47  ;;  %v165_v47 = vld [vmem:[#allocation5 + $0x2a8] sm:$0xff] }
  0x76   :  { %v2272_v49 = vcombine.high %v161_v46, %v165_v47 }
  0x78   :  { %911 = vmatpush1.bf16.msra.mxu1 %v2269_v48  ;;  %v2263_v48 = vcombine.low %v153_v42, %v157_v43  ;;  %v126_v42 = vld [vmem:[#allocation5 + $0x170] sm:$0xff] }
  0x79   :  { %912 = vmatprep.subr.bf16.mxu1 %v2278_v51  ;;  %v173_v51 = vld [vmem:[#allocation5 + $0x2e8] sm:$0xff] }
  0x7a   :  { %v2280_v53 = vcombine.high %v169_v50, %v173_v51  ;;  %v2492_v43 = vld [vmem:[#allocation8 + $0x60] ss:$8 sps:$4 sm:$0xff]  }
  0x7c   :  { %913 = vmatpush1.bf16.msra.mxu1 %v2277_v52  ;;  %v2271_v52 = vcombine.low %v161_v46, %v165_v47  ;;  %v130_v47 = vld [vmem:[#allocation5 + $0x190] sm:$0xff] }
  0x7d   :  { %914 = vmatprep.subr.bf16.mxu1 %v2286_v55  ;;  %v181_v55 = vld [vmem:[#allocation5 + $0x328] sm:$0xff] }
  0x7e   :  { %v2288_v57 = vcombine.high %v177_v54, %v181_v55 }
  0x80   :  { %915 = vmatpush1.bf16.msra.mxu1 %v2285_v56  ;;  %v2279_v56 = vcombine.low %v169_v50, %v173_v51 }
  0x81   :  { %916 = vmatprep.subr.bf16.mxu1 %v2294_v59  ;;  %v189_v59 = vld [vmem:[#allocation5 + $0x368] sm:$0xff] }
  0x82   :  { %v2296_v61 = vcombine.high %v185_v58, %v189_v59 }
  0x84   :  { %917 = vmatpush1.bf16.msra.mxu1 %v2293_v60  ;;  %v2287_v60 = vcombine.low %v177_v54, %v181_v55  ;;  %v2496_v54 = vld [vmem:[#allocation8 + $0x84] ss:$8 sps:$4 sm:$0xff]   ;;  %v2498_v55 = vld [vmem:[#allocation8 + $0x80] ss:$8 sps:$4 sm:$0xff]  }
  0x85   :  { %918 = vmatprep.subr.bf16.mxu1 %v2302_v63  ;;  %v197_v63 = vld [vmem:[#allocation5 + $0x3a8] sm:$0xff] }
  0x86   :  { %v2304_v1 = vcombine.high %v193_v62, %v197_v63 }
  0x88   :  { %919 = vmatpush1.bf16.msra.mxu1 %v2301_v0  ;;  %v2295_v0 = vcombine.low %v185_v58, %v189_v59  ;;  %v146_v58 = vld [vmem:[#allocation5 + $0x210] sm:$0xff] }
  0x89   :  { %920 = vmatprep.subr.bf16.mxu1 %v2310_v3  ;;  %v205_v3 = vld [vmem:[#allocation5 + $0x3e8] sm:$0xff]  ;;  %v150_v59 = vld [vmem:[#allocation5 + $0x230] sm:$0xff] }
  0x8a   :  { %v2312_v7 = vcombine.high %v201_v2, %v205_v3  ;;  %v2311_v13 = vcombine.low %v201_v2, %v205_v3  ;;  %v2502_v2 = vld [vmem:[#allocation8 + $0xa4] ss:$8 sps:$4 sm:$0xff]   ;;  %v2504_v3 = vld [vmem:[#allocation8 + $0xa0] ss:$8 sps:$4 sm:$0xff]   ;;  %v2257_v4 = vcombine.low %v146_v58, %v150_v59 }
  0x8c   :  { %921 = vmatpush1.bf16.msra.mxu1 %v2309_v6  ;;  %v2303_v6 = vcombine.low %v193_v62, %v197_v63  ;;  %v2258_v63 = vcombine.high %v146_v58, %v150_v59  ;;  %v115_v59 = vld [vmem:[#allocation5 + $0x118] sm:$0xff] }
  0x8d   :  { %933 = vmatprep.subr.bf16.mxu1 %v2192_v9  ;;  %v86_v9 = vld [vmem:[#allocation5 + $0x30] sm:$0xff] }
  0x8f   :  { %923 = vmatmul.mubr.bf16.vlgmr.msra.gmra.mrb[0].mxu1 %v2916_v10 }
  0x90   :  { %934 = vmatpush1.bf16.msra.mxu1 %v2191_v11  ;;  %965 = vmatprep.mubr.bf16.mxu1 %v2913_v20  ;;  %v2475_v11 = vld [vmem:[#allocation8 + $0x14] ss:$8 sps:$4 sm:$0xff]  }
  0x91   :  { %935 = vmatprep.subr.bf16.mxu1 %v2200_v14  ;;  %1996 = vmatprep.subr.bf16.mxu0 %v2475_v11  ;;  %v2194_v14 = vcombine.high %v82_v8, %v86_v9 }
  0x92   :  { %1997 = vmatpush1.bf16.msra.mxu0 %v2477_v12 }
  0x93   :  { %1998 = vmatprep.subr.bf16.mxu0 %v2478_v17  ;;  %v2511_v17 = vld [vmem:[#allocation8 + $0xd4] ss:$8 sps:$4 sm:$0xff]  }
  0x94   :  { %936 = vmatpush1.bf16.msra.mxu1 %v2199_v15  ;;  %v90_v15 = vld [vmem:[#allocation5 + $0x50] sm:$0xff] }
  0x95   :  { %937 = vmatprep.subr.bf16.mxu1 %v2208_v18  ;;  %v2480_v18 = vld [vmem:[#allocation8 + $0x20] ss:$8 sps:$4 sm:$0xff]   ;;  %v2202_v21 = vcombine.high %v90_v15, %v94_v16  ;;  %v2201_v27 = vcombine.low %v90_v15, %v94_v16 }
  0x96   :  { %1999 = vmatpush1.bf16.msra.mxu0 %v2480_v18  ;;  %v174_v15 = vld [vmem:[#allocation5 + $0x2f0] sm:$0xff] }
  0x97   :  { %v2510_v16 = vld [vmem:[#allocation8 + $0xc0] ss:$8 sps:$4 sm:$0xff]  }
  0x98   :  { %938 = vmatpush1.bf16.msra.mxu1 %v2207_v19  ;;  %v2193_v19 = vcombine.low %v82_v8, %v86_v9  ;;  %v2505_v8 = vld [vmem:[#allocation8 + $0xb4] ss:$8 sps:$4 sm:$0xff]   ;;  %v2507_v9 = vld [vmem:[#allocation8 + $0xb0] ss:$8 sps:$4 sm:$0xff]  }
  0x99   :  { %939 = vmatprep.subr.bf16.mxu1 %v2216_v23  ;;  %v102_v23 = vld [vmem:[#allocation5 + $0xb0] sm:$0xff] }
  0x9c   :  { %940 = vmatpush1.bf16.msra.mxu1 %v2215_v24  ;;  %v2481_v24 = vld [vmem:[#allocation8 + $0x34] ss:$8 sps:$4 sm:$0xff]  }
  0x9d   :  { %941 = vmatprep.subr.bf16.mxu1 %v2224_v26  ;;  %v2484_v26 = vld [vmem:[#allocation8 + $0x44] ss:$8 sps:$4 sm:$0xff]   ;;  %2000 = vmatprep.subr.bf16.mxu0 %v2481_v24 }
  0x9e   :  { %2001 = vmatpush1.bf16.msra.mxu0 %v2483_v25  ;;  %v2514_v24 = vld [vmem:[#allocation8 + $0xe4] ss:$8 sps:$4 sm:$0xff]  }
  0x9f   :  { %2002 = vmatprep.subr.bf16.mxu0 %v2484_v26 }
  0xa0   :  { %942 = vmatpush1.bf16.msra.mxu1 %v2223_v28  ;;  %v2210_v28 = vcombine.high %v98_v22, %v102_v23 }
  0xa1   :  { %943 = vmatprep.subr.bf16.mxu1 %v2232_v29  ;;  %v106_v29 = vld [vmem:[#allocation5 + $0xd0] sm:$0xff] }
  0xa2   :  { %v2218_v34 = vcombine.high %v106_v29, %v110_v30  ;;  %2003 = vmatpush1.bf16.msra.mxu0 %v2486_v31  ;;  %v2217_v39 = vcombine.low %v106_v29, %v110_v30  ;;  %v2516_v29 = vld [vmem:[#allocation8 + $0xe0] ss:$8 sps:$4 sm:$0xff]   ;;  %v2517_v30 = vld [vmem:[#allocation8 + $0xf4] ss:$8 sps:$4 sm:$0xff]  }
  0xa4   :  { %944 = vmatpush1.bf16.msra.mxu1 %v2231_v32  ;;  %v2487_v32 = vld [vmem:[#allocation8 + $0x54] ss:$8 sps:$4 sm:$0xff]  }
  0xa5   :  { %945 = vmatprep.subr.bf16.mxu1 %v2240_v33  ;;  %v2209_v33 = vcombine.low %v98_v22, %v102_v23  ;;  %2004 = vmatprep.subr.bf16.mxu0 %v2487_v32  ;;  %v182_v22 = vld [vmem:[#allocation5 + $0x330] sm:$0xff]  ;;  %v2513_v23 = vld [vmem:[#allocation8 + $0xd0] ss:$8 sps:$4 sm:$0xff]  }
  0xa8   :  { %946 = vmatpush1.bf16.msra.mxu1 %v2239_v36  ;;  %v118_v36 = vld [vmem:[#allocation5 + $0x130] sm:$0xff] }
  0xa9   :  { %947 = vmatprep.subr.bf16.mxu1 %v2248_v37  ;;  %v2489_v37 = vld [vmem:[#allocation8 + $0x50] ss:$8 sps:$4 sm:$0xff]  }
  0xaa   :  { %2005 = vmatpush1.bf16.msra.mxu0 %v2489_v37 }
  0xab   :  { %2006 = vmatprep.subr.bf16.mxu0 %v2490_v38  ;;  %v202_v38 = vld [vmem:[#allocation5 + $0x3d0] sm:$0xff] }
  0xac   :  { %948 = vmatpush1.bf16.msra.mxu1 %v2247_v40  ;;  %v2226_v40 = vcombine.high %v114_v35, %v118_v36 }
  0xad   :  { %949 = vmatprep.subr.bf16.mxu1 %v2256_v41  ;;  %v122_v41 = vld [vmem:[#allocation5 + $0x150] sm:$0xff] }
  0xae   :  { %v2234_v46 = vcombine.high %v122_v41, %v126_v42  ;;  %2007 = vmatpush1.bf16.msra.mxu0 %v2492_v43  ;;  %v2233_v50 = vcombine.low %v122_v41, %v126_v42  ;;  %v83_v43 = vld [vmem:[#allocation5 + $0x18] sm:$0xff] }
  0xb0   :  { %950 = vmatpush1.bf16.msra.mxu1 %v2255_v44  ;;  %v2493_v44 = vld [vmem:[#allocation8 + $0x74] ss:$8 sps:$4 sm:$0xff]  }
  0xb1   :  { %951 = vmatprep.subr.bf16.mxu1 %v2264_v45  ;;  %v2225_v45 = vcombine.low %v114_v35, %v118_v36  ;;  %2008 = vmatprep.subr.bf16.mxu0 %v2493_v44  ;;  %v2519_v35 = vld [vmem:[#allocation8 + $0xf0] ss:$8 sps:$4 sm:$0xff]  }
  0xb2   :  { %v87_v44 = vld [vmem:[#allocation5 + $0x38] sm:$0xff] }
  0xb4   :  { %952 = vmatpush1.bf16.msra.mxu1 %v2263_v48  ;;  %v134_v48 = vld [vmem:[#allocation5 + $0x1b0] sm:$0xff] }
  0xb5   :  { %953 = vmatprep.subr.bf16.mxu1 %v2272_v49  ;;  %v2495_v49 = vld [vmem:[#allocation8 + $0x70] ss:$8 sps:$4 sm:$0xff]   ;;  %v2242_v51 = vcombine.high %v130_v47, %v134_v48 }
  0xb6   :  { %2009 = vmatpush1.bf16.msra.mxu0 %v2495_v49  ;;  %v2195_v49 = vcombine.low %v83_v43, %v87_v44 }
  0xb7   :  { %2010 = vmatprep.subr.bf16.mxu0 %v2496_v54 }
  0xb8   :  { %954 = vmatpush1.bf16.msra.mxu1 %v2271_v52  ;;  %v138_v52 = vld [vmem:[#allocation5 + $0x1d0] sm:$0xff] }
  0xb9   :  { %955 = vmatprep.subr.bf16.mxu1 %v2280_v53  ;;  %v142_v53 = vld [vmem:[#allocation5 + $0x1f0] sm:$0xff] }
  0xba   :  { %2011 = vmatpush1.bf16.msra.mxu0 %v2498_v55  ;;  %v2249_v62 = vcombine.low %v138_v52, %v142_v53  ;;  %v107_v55 = vld [vmem:[#allocation5 + $0xd8] sm:$0xff] }
  0xbc   :  { %956 = vmatpush1.bf16.msra.mxu1 %v2279_v56  ;;  %v2241_v56 = vcombine.low %v130_v47, %v134_v48  ;;  %v91_v47 = vld [vmem:[#allocation5 + $0x58] sm:$0xff] }
  0xbd   :  { %957 = vmatprep.subr.bf16.mxu1 %v2288_v57  ;;  %v2250_v57 = vcombine.high %v138_v52, %v142_v53  ;;  %v95_v48 = vld [vmem:[#allocation5 + $0x78] sm:$0xff] }
  0xbe   :  { %v103_v52 = vld [vmem:[#allocation5 + $0xb8] sm:$0xff]  ;;  %v2203_v53 = vcombine.low %v91_v47, %v95_v48 }
  0xc0   :  { %958 = vmatpush1.bf16.msra.mxu1 %v2287_v60  ;;  %v2499_v60 = vld [vmem:[#allocation8 + $0x94] ss:$8 sps:$4 sm:$0xff]  }
  0xc1   :  { %959 = vmatprep.subr.bf16.mxu1 %v2296_v61  ;;  %v2501_v61 = vld [vmem:[#allocation8 + $0x90] ss:$8 sps:$4 sm:$0xff]   ;;  %2012 = vmatprep.subr.bf16.mxu0 %v2499_v60 }
  0xc2   :  { %2013 = vmatpush1.bf16.msra.mxu0 %v2501_v61  ;;  %v119_v60 = vld [vmem:[#allocation5 + $0x138] sm:$0xff] }
  0xc3   :  { %2014 = vmatprep.subr.bf16.mxu0 %v2502_v2  ;;  %v131_v2 = vld [vmem:[#allocation5 + $0x198] sm:$0xff] }
  0xc4   :  { %960 = vmatpush1.bf16.msra.mxu1 %v2295_v0  ;;  %v154_v0 = vld [vmem:[#allocation5 + $0x250] sm:$0xff] }
  0xc5   :  { %961 = vmatprep.subr.bf16.mxu1 %v2304_v1  ;;  %v158_v1 = vld [vmem:[#allocation5 + $0x270] sm:$0xff] }
  0xc6   :  { %v2266_v5 = vcombine.high %v154_v0, %v158_v1  ;;  %2015 = vmatpush1.bf16.msra.mxu0 %v2504_v3  ;;  %v2265_v11 = vcombine.low %v154_v0, %v158_v1  ;;  %v127_v0 = vld [vmem:[#allocation5 + $0x178] sm:$0xff]  ;;  %v2227_v1 = vcombine.low %v115_v59, %v119_v60 }
  0xc7   :  { %2016 = vmatprep.subr.bf16.mxu0 %v2505_v8  ;;  %v135_v3 = vld [vmem:[#allocation5 + $0x1b8] sm:$0xff] }
  0xc8   :  { %962 = vmatpush1.bf16.msra.mxu1 %v2303_v6  ;;  %v162_v6 = vld [vmem:[#allocation5 + $0x290] sm:$0xff]  ;;  %v2243_v8 = vcombine.low %v131_v2, %v135_v3 }
  0xc9   :  { %963 = vmatprep.subr.bf16.mxu1 %v2312_v7  ;;  %v166_v7 = vld [vmem:[#allocation5 + $0x2b0] sm:$0xff] }
  0xca   :  { %v2274_v12 = vcombine.high %v162_v6, %v166_v7  ;;  %2017 = vmatpush1.bf16.msra.mxu0 %v2507_v9  ;;  %v2273_v18 = vcombine.low %v162_v6, %v166_v7  ;;  %v139_v6 = vld [vmem:[#allocation5 + $0x1d8] sm:$0xff] }
  0xcb   :  { %v143_v7 = vld [vmem:[#allocation5 + $0x1f8] sm:$0xff] }
  0xcc   :  { %964 = vmatpush1.bf16.msra.mxu1 %v2311_v13  ;;  %v2508_v13 = vld [vmem:[#allocation8 + $0xc4] ss:$8 sps:$4 sm:$0xff]   ;;  %v2252_v9 = vcombine.high %v139_v6, %v143_v7 }
  0xcd   :  { %976 = vmatprep.subr.bf16.mxu1 %v2194_v14  ;;  %v170_v14 = vld [vmem:[#allocation5 + $0x2d0] sm:$0xff]  ;;  %2018 = vmatprep.subr.bf16.mxu0 %v2508_v13  ;;  %v2251_v13 = vcombine.low %v139_v6, %v143_v7 }
  0xce   :  { %2019 = vmatpush1.bf16.msra.mxu0 %v2510_v16  ;;  %v2281_v25 = vcombine.low %v170_v14, %v174_v15  ;;  %v159_v16 = vld [vmem:[#allocation5 + $0x278] sm:$0xff] }
  0xcf   :  { %966 = vmatmul.mubr.bf16.vlgmr.msra.gmra.mrb[4].mxu1 %v2916_v10  ;;  %2020 = vmatprep.subr.bf16.mxu0 %v2511_v17 }
  0xd0   :  { %977 = vmatpush1.bf16.msra.mxu1 %v2193_v19  ;;  %1008 = vmatprep.mubr.bf16.mxu1 %v2913_v20  ;;  %v2282_v19 = vcombine.high %v170_v14, %v174_v15  ;;  %v155_v15 = vld [vmem:[#allocation5 + $0x258] sm:$0xff] }
  0xd1   :  { %978 = vmatprep.subr.bf16.mxu1 %v2202_v21  ;;  %v178_v21 = vld [vmem:[#allocation5 + $0x310] sm:$0xff] }
  0xd2   :  { %v2290_v26 = vcombine.high %v178_v21, %v182_v22  ;;  %2021 = vmatpush1.bf16.msra.mxu0 %v2513_v23  ;;  %v2289_v31 = vcombine.low %v178_v21, %v182_v22  ;;  %v167_v21 = vld [vmem:[#allocation5 + $0x2b8] sm:$0xff]  ;;  %v2267_v22 = vcombine.low %v155_v15, %v159_v16 }
  0xd3   :  { %2022 = vmatprep.subr.bf16.mxu0 %v2514_v24  ;;  %v171_v24 = vld [vmem:[#allocation5 + $0x2d8] sm:$0xff] }
  0xd4   :  { %979 = vmatpush1.bf16.msra.mxu1 %v2201_v27  ;;  %v186_v27 = vld [vmem:[#allocation5 + $0x350] sm:$0xff] }
  0xd5   :  { %980 = vmatprep.subr.bf16.mxu1 %v2210_v28  ;;  %v190_v28 = vld [vmem:[#allocation5 + $0x370] sm:$0xff] }
  0xd6   :  { %v2298_v32 = vcombine.high %v186_v27, %v190_v28  ;;  %2023 = vmatpush1.bf16.msra.mxu0 %v2516_v29  ;;  %v2297_v36 = vcombine.low %v186_v27, %v190_v28  ;;  %v179_v28 = vld [vmem:[#allocation5 + $0x318] sm:$0xff] }
  0xd7   :  { %2024 = vmatprep.subr.bf16.mxu0 %v2517_v30  ;;  %v183_v29 = vld [vmem:[#allocation5 + $0x338] sm:$0xff] }
  0xd8   :  { %981 = vmatpush1.bf16.msra.mxu1 %v2209_v33  ;;  %v194_v33 = vld [vmem:[#allocation5 + $0x390] sm:$0xff] }
  0xd9   :  { %982 = vmatprep.subr.bf16.mxu1 %v2218_v34  ;;  %v198_v34 = vld [vmem:[#allocation5 + $0x3b0] sm:$0xff] }
  0xda   :  { %v2306_v37 = vcombine.high %v194_v33, %v198_v34  ;;  %2025 = vmatpush1.bf16.msra.mxu0 %v2519_v35  ;;  %v2305_v41 = vcombine.low %v194_v33, %v198_v34  ;;  %v191_v33 = vld [vmem:[#allocation5 + $0x378] sm:$0xff]  ;;  %v2291_v34 = vcombine.low %v179_v28, %v183_v29 }
  0xdc   :  { %983 = vmatpush1.bf16.msra.mxu1 %v2217_v39  ;;  %v206_v39 = vld [vmem:[#allocation5 + $0x3f0] sm:$0xff] }
  0xdd   :  { %984 = vmatprep.subr.bf16.mxu1 %v2226_v40  ;;  %v2522_v40 = vld [vmem:[#allocation8 + $0x104] ss:$8 sps:$4 sm:$0xff]   ;;  %v2314_v42 = vcombine.high %v202_v38, %v206_v39 }
  0xde   :  { %2037 = vmatprep.subr.bf16.mxu0 %v2522_v40  ;;  %v203_v40 = vld [vmem:[#allocation5 + $0x3d8] sm:$0xff] }
  0xe0   :  { %985 = vmatpush1.bf16.msra.mxu1 %v2225_v45  ;;  %v2313_v45 = vcombine.low %v202_v38, %v206_v39 }
  0xe1   :  { %986 = vmatprep.subr.bf16.mxu1 %v2234_v46  ;;  %v2196_v46 = vcombine.high %v83_v43, %v87_v44 }
  0xe4   :  { %987 = vmatpush1.bf16.msra.mxu1 %v2233_v50  ;;  %v2204_v50 = vcombine.high %v91_v47, %v95_v48  ;;  %v2928_v48 = vld [vmem:[#allocation7] sm:$0xff] }
  0xe5   :  { %988 = vmatprep.subr.bf16.mxu1 %v2242_v51  ;;  %v99_v51 = vld [vmem:[#allocation5 + $0x98] sm:$0xff] }
  0xe6   :  { %v2212_v54 = vcombine.high %v99_v51, %v103_v52 }
  0xe8   :  { %989 = vmatpush1.bf16.msra.mxu1 %v2241_v56  ;;  %v111_v56 = vld [vmem:[#allocation5 + $0xf8] sm:$0xff] }
  0xe9   :  { %990 = vmatprep.subr.bf16.mxu1 %v2250_v57  ;;  %v2211_v57 = vcombine.low %v99_v51, %v103_v52  ;;  %v2220_v58 = vcombine.high %v107_v55, %v111_v56  ;;  %v2219_v61 = vcombine.low %v107_v55, %v111_v56 }
  0xec   :  { %991 = vmatpush1.bf16.msra.mxu1 %v2249_v62  ;;  %v2228_v62 = vcombine.high %v115_v59, %v119_v60 }
  0xed   :  { %992 = vmatprep.subr.bf16.mxu1 %v2258_v63  ;;  %v123_v63 = vld [vmem:[#allocation5 + $0x158] sm:$0xff] }
  0xf0   :  { %993 = vmatpush1.bf16.msra.mxu1 %v2257_v4  ;;  %v2235_v4 = vcombine.low %v123_v63, %v127_v0 }
  0xf1   :  { %994 = vmatprep.subr.bf16.mxu1 %v2266_v5  ;;  %v2244_v5 = vcombine.high %v131_v2, %v135_v3 }
  0xf4   :  { %995 = vmatpush1.bf16.msra.mxu1 %v2265_v11  ;;  %v147_v11 = vld [vmem:[#allocation5 + $0x218] sm:$0xff] }
  0xf5   :  { %996 = vmatprep.subr.bf16.mxu1 %v2274_v12  ;;  %v151_v12 = vld [vmem:[#allocation5 + $0x238] sm:$0xff] }
  0xf6   :  { %v2260_v14 = vcombine.high %v147_v11, %v151_v12  ;;  %v2259_v17 = vcombine.low %v147_v11, %v151_v12 }
  0xf8   :  { %997 = vmatpush1.bf16.msra.mxu1 %v2273_v18  ;;  %v2268_v18 = vcombine.high %v155_v15, %v159_v16 }
  0xf9   :  { %998 = vmatprep.subr.bf16.mxu1 %v2282_v19  ;;  %v163_v19 = vld [vmem:[#allocation5 + $0x298] sm:$0xff] }
  0xfa   :  { %v2276_v23 = vcombine.high %v163_v19, %v167_v21 }
  0xfc   :  { %999 = vmatpush1.bf16.msra.mxu1 %v2281_v25  ;;  %v175_v25 = vld [vmem:[#allocation5 + $0x2f8] sm:$0xff] }
  0xfd   :  { %1000 = vmatprep.subr.bf16.mxu1 %v2290_v26  ;;  %v2275_v26 = vcombine.low %v163_v19, %v167_v21  ;;  %v2284_v27 = vcombine.high %v171_v24, %v175_v25  ;;  %v2283_v30 = vcombine.low %v171_v24, %v175_v25 }
 0x100   :  { %1001 = vmatpush1.bf16.msra.mxu1 %v2289_v31  ;;  %v2292_v31 = vcombine.high %v179_v28, %v183_v29 }
 0x101   :  { %1002 = vmatprep.subr.bf16.mxu1 %v2298_v32  ;;  %v187_v32 = vld [vmem:[#allocation5 + $0x358] sm:$0xff] }
 0x102   :  { %v2300_v35 = vcombine.high %v187_v32, %v191_v33  ;;  %v2299_v38 = vcombine.low %v187_v32, %v191_v33 }
 0x104   :  { %1003 = vmatpush1.bf16.msra.mxu1 %v2297_v36  ;;  %v195_v36 = vld [vmem:[#allocation5 + $0x398] sm:$0xff] }
 0x105   :  { %1004 = vmatprep.subr.bf16.mxu1 %v2306_v37  ;;  %v199_v37 = vld [vmem:[#allocation5 + $0x3b8] sm:$0xff] }
 0x106   :  { %v2308_v39 = vcombine.high %v195_v36, %v199_v37 }
 0x108   :  { %1005 = vmatpush1.bf16.msra.mxu1 %v2305_v41  ;;  %v207_v41 = vld [vmem:[#allocation5 + $0x3f8] sm:$0xff] }
 0x109   :  { %1006 = vmatprep.subr.bf16.mxu1 %v2314_v42  ;;  %v2307_v42 = vcombine.low %v195_v36, %v199_v37  ;;  %v2316_v43 = vcombine.high %v203_v40, %v207_v41  ;;  %v2315_v44 = vcombine.low %v203_v40, %v207_v41  ;;  %v2523_v36 = vld [vmem:[#allocation8 + $0x110] ss:$8 sps:$4 sm:$0xff]   ;;  %v2528_v37 = vld [vmem:[#allocation8 + $0x124] ss:$8 sps:$4 sm:$0xff]  }
 0x10a   :  { %v2529_v40 = vld [vmem:[#allocation8 + $0x130] ss:$8 sps:$4 sm:$0xff]   ;;  %v2534_v41 = vld [vmem:[#allocation8 + $0x144] ss:$8 sps:$4 sm:$0xff]  }
 0x10c   :  { %1007 = vmatpush1.bf16.msra.mxu1 %v2313_v45  ;;  %v210_v45 = vlaneseq }
 0x10d   :  { %1019 = vmatprep.subr.bf16.mxu1 %v2196_v46 }
 0x10e   :  { %v2925_v46 = vshrl.u32 %v210_v45, 7  ;;  %v2540_v45 = vld [vmem:[#allocation8 + $0x164] ss:$8 sps:$4 sm:$0xff]  }
 0x10f   :  { %1009 = vmatmul.mubr.bf16.vlgmr.msra.gmra.mrb[8].mxu1 %v2916_v10 }
 0x110   :  { %1020 = vmatpush1.bf16.msra.mxu1 %v2195_v49  ;;  %1051 = vmatprep.mubr.bf16.mxu1 %v2913_v20  ;;  %v2236_v20 = vcombine.high %v123_v63, %v127_v0  ;;  %v212_v47 = vsub.s32 0, %v2925_v46  ;;  %v216_v49 = vsub.s32 1, %v2925_v46 }
 0x111   :  { %1021 = vmatprep.subr.bf16.mxu1 %v2204_v50 }
 0x112   :  { %v213_v50 = vrot.slane %v2928_v48, %v212_v47  ;;  %v217_v51 = vrot.slane %v2928_v48, %v216_v49 }
 0x114   :  { %1022 = vmatpush1.bf16.msra.mxu1 %v2203_v53 }
 0x115   :  { %1023 = vmatprep.subr.bf16.mxu1 %v2212_v54 }
 0x118   :  { %1024 = vmatpush1.bf16.msra.mxu1 %v2211_v57 }
 0x119   :  { %1025 = vmatprep.subr.bf16.mxu1 %v2220_v58 }
 0x11c   :  { %1026 = vmatpush1.bf16.msra.mxu1 %v2219_v61 }
 0x11d   :  { %1027 = vmatprep.subr.bf16.mxu1 %v2228_v62 }
 0x120   :  { %1028 = vmatpush1.bf16.msra.mxu1 %v2227_v1 }
 0x121   :  { %1029 = vmatprep.subr.bf16.mxu1 %v2236_v20 }
 0x124   :  { %1030 = vmatpush1.bf16.msra.mxu1 %v2235_v4 }
 0x125   :  { %1031 = vmatprep.subr.bf16.mxu1 %v2244_v5 }
 0x128   :  { %1032 = vmatpush1.bf16.msra.mxu1 %v2243_v8 }
 0x129   :  { %1033 = vmatprep.subr.bf16.mxu1 %v2252_v9 }
 0x12c   :  { %1034 = vmatpush1.bf16.msra.mxu1 %v2251_v13 }
 0x12d   :  { %1035 = vmatprep.subr.bf16.mxu1 %v2260_v14 }
 0x130   :  { %1036 = vmatpush1.bf16.msra.mxu1 %v2259_v17 }
 0x131   :  { %1037 = vmatprep.subr.bf16.mxu1 %v2268_v18 }
 0x134   :  { %1038 = vmatpush1.bf16.msra.mxu1 %v2267_v22 }
 0x135   :  { %1039 = vmatprep.subr.bf16.mxu1 %v2276_v23 }
 0x138   :  { %1040 = vmatpush1.bf16.msra.mxu1 %v2275_v26 }
 0x139   :  { %1041 = vmatprep.subr.bf16.mxu1 %v2284_v27 }
 0x13c   :  { %1042 = vmatpush1.bf16.msra.mxu1 %v2283_v30 }
 0x13d   :  { %1043 = vmatprep.subr.bf16.mxu1 %v2292_v31 }
 0x140   :  { %1044 = vmatpush1.bf16.msra.mxu1 %v2291_v34  ;;  %v2520_v34 = vld [vmem:[#allocation8 + $0x100] ss:$8 sps:$4 sm:$0xff]  }
 0x141   :  { %1045 = vmatprep.subr.bf16.mxu1 %v2300_v35  ;;  %v2525_v35 = vld [vmem:[#allocation8 + $0x114] ss:$8 sps:$4 sm:$0xff]  }
 0x144   :  { %1046 = vmatpush1.bf16.msra.mxu1 %v2299_v38  ;;  %v2526_v38 = vld [vmem:[#allocation8 + $0x120] ss:$8 sps:$4 sm:$0xff]  }
 0x145   :  { %1047 = vmatprep.subr.bf16.mxu1 %v2308_v39  ;;  %v2531_v39 = vld [vmem:[#allocation8 + $0x134] ss:$8 sps:$4 sm:$0xff]  }
 0x148   :  { %1048 = vmatpush1.bf16.msra.mxu1 %v2307_v42  ;;  %v2532_v42 = vld [vmem:[#allocation8 + $0x140] ss:$8 sps:$4 sm:$0xff]  }
 0x149   :  { %1049 = vmatprep.subr.bf16.mxu1 %v2316_v43  ;;  %v2537_v43 = vld [vmem:[#allocation8 + $0x154] ss:$8 sps:$4 sm:$0xff]  }
 0x14c   :  { %1050 = vmatpush1.bf16.msra.mxu1 %v2315_v44  ;;  %v2535_v44 = vld [vmem:[#allocation8 + $0x150] ss:$8 sps:$4 sm:$0xff]  }
 0x14f   :  { %1052 = vmatmul.mubr.bf16.vlgmr.msra.gmra.mrb[12].mxu1 %v2916_v10 }
 0x162   :  { %v924_v52 = vpop.f32.mrb[0].mxu1 }
 0x163   :  { %v925_v53 = vadd.f32 %v924_v52, %v213_v50  ;;  %v926_v10 = vpop.f32.mrb[1].mxu1  ;;  %v220_v52 = vsub.s32 2, %v2925_v46 }
 0x164   :  { %v927_v54 = vadd.f32 %v926_v10, %v217_v51  ;;  %v928_v55 = vpop.f32.mrb[2].mxu1  ;;  %v2541_v10 = vld [vmem:[#allocation8 + $0x170] ss:$8 sps:$4 sm:$0xff]  }
 0x165   :  { %v1078_v56 = vmul.f32 %v925_v53, %v925_v53  ;;  %v929_v57 = vadd.f32 %v928_v55, %v213_v50  ;;  %v930_v58 = vpop.f32.mrb[3].mxu1  ;;  %v1062_v22 = vmul.f32 0.5, %v925_v53  ;;  %v2538_v50 = vld [vmem:[#allocation8 + $0x160] ss:$8 sps:$4 sm:$0xff]   ;;  %v221_v55 = vrot.slane %v2928_v48, %v220_v52 }
 0x166   :  { %v1079_v59 = vmul.f32 %v927_v54, %v927_v54  ;;  %v931_v60 = vadd.f32 %v930_v58, %v217_v51  ;;  %v1063_v25 = vmul.f32 0.5, %v927_v54  ;;  %v2543_v51 = vld [vmem:[#allocation8 + $0x174] ss:$8 sps:$4 sm:$0xff]  }
 0x167   :  { %v1094_v61 = vmul.f32 %v1078_v56, %v925_v53  ;;  %v1086_v62 = vmul.f32 %v929_v57, %v929_v57  ;;  %v1070_v23 = vmul.f32 0.5, %v929_v57 }
 0x168   :  { %v1095_v63 = vmul.f32 %v1079_v59, %v927_v54  ;;  %v1087_v0 = vmul.f32 %v931_v60, %v931_v60  ;;  %v1071_v26 = vmul.f32 0.5, %v931_v60  ;;  %v2549_v59 = vld [vmem:[#allocation8 + $0x194] ss:$8 sps:$4 sm:$0xff]  }
 0x169   :  { %v1110_v1 = vmul.f32 0.044715, %v1094_v61  ;;  %v1102_v20 = vmul.f32 %v1086_v62, %v929_v57 }
 0x16a   :  { %v1111_v2 = vmul.f32 0.044715, %v1095_v63  ;;  %v1103_v3 = vmul.f32 %v1087_v0, %v931_v60 }
 0x16b   :  { %v1126_v4 = vadd.f32 %v1110_v1, %v925_v53  ;;  %v1118_v5 = vmul.f32 0.044715, %v1102_v20  ;;  %v224_v53 = vsub.s32 3, %v2925_v46 }
 0x16c   :  { %v1119_v6 = vmul.f32 0.044715, %v1103_v3  ;;  %v1127_v7 = vadd.f32 %v1111_v2, %v927_v54  ;;  %v2546_v54 = vld [vmem:[#allocation8 + $0x184] ss:$8 sps:$4 sm:$0xff]   ;;  %v2547_v2 = vld [vmem:[#allocation8 + $0x190] ss:$8 sps:$4 sm:$0xff]  }
 0x16d   :  { %v1142_v8 = vmul.f32 0.7978846, %v1126_v4  ;;  %v1134_v9 = vadd.f32 %v1118_v5, %v929_v57  ;;  %v225_v56 = vrot.slane %v2928_v48, %v224_v53  ;;  %v2544_v57 = vld [vmem:[#allocation8 + $0x180] ss:$8 sps:$4 sm:$0xff]   ;;  %v2552_v5 = vld [vmem:[#allocation8 + $0x1a4] ss:$8 sps:$4 sm:$0xff]  }
 0x16e   :  { %v1135_v11 = vadd.f32 %v1119_v6, %v931_v60  ;;  %v1143_v12 = vmul.f32 0.7978846, %v1127_v7 }
 0x16f   :  { %2664 = vtanh.f32 %v1142_v8  ;;  %v1150_v13 = vmul.f32 0.7978846, %v1134_v9 }
 0x170   :  { %v1151_v14 = vmul.f32 0.7978846, %v1135_v11  ;;  %2666 = vtanh.f32 %v1143_v12 }
 0x171   :  { %2668 = vtanh.f32 %v1150_v13  ;;  %v2550_v13 = vld [vmem:[#allocation8 + $0x1a0] ss:$8 sps:$4 sm:$0xff]  }
 0x172   :  { %2670 = vtanh.f32 %v1151_v14 }
 0x179   :  { %v2665_v15 = vpop.eup %2664 }
 0x17a   :  { %v2667_v16 = vpop.eup %2666  ;;  %v1174_v17 = vadd.f32 1.0, %v2665_v15 }
 0x17b   :  { %v2669_v18 = vpop.eup %2668  ;;  %v1175_v19 = vadd.f32 1.0, %v2667_v16  ;;  %v2555_v16 = vld [vmem:[#allocation8 + $0x1b4] ss:$8 sps:$4 sm:$0xff]  }
 0x17c   :  { %v2671_v21 = vpop.eup %2670  ;;  %v1182_v24 = vadd.f32 1.0, %v2669_v18  ;;  %v1190_v28 = vmul.f32 %v1174_v17, %v1062_v22 }
 0x17d   :  { %v1183_v27 = vadd.f32 1.0, %v2671_v21  ;;  %v1191_v30 = vmul.f32 %v1175_v19, %v1063_v25 }
 0x17e   :  { %v1198_v29 = vmul.f32 %v1182_v24, %v1070_v23  ;;  %v2553_v24 = vld [vmem:[#allocation8 + $0x1b0] ss:$8 sps:$4 sm:$0xff]  }
 0x17f   :  { %v1199_v31 = vmul.f32 %v1183_v27, %v1071_v26  ;;  %v2558_v27 = vld [vmem:[#allocation8 + $0x1c4] ss:$8 sps:$4 sm:$0xff]  }
 0x180   :  { %v1206_v32 = vpack.c.bf16 %v1198_v29, %v1190_v28 }
 0x181   :  { %v1207_v33 = vpack.c.bf16 %v1199_v31, %v1191_v30  ;;  %v2556_v30 = vld [vmem:[#allocation8 + $0x1c0] ss:$8 sps:$4 sm:$0xff]   ;;  %v2561_v31 = vld [vmem:[#allocation8 + $0x1d4] ss:$8 sps:$4 sm:$0xff]  }
 0x183   :  { %2026 = vmatprep.mubr.bf16.mxu0 %v1207_v33  ;;  %v2564_v33 = vld [vmem:[#allocation8 + $0x1e4] ss:$8 sps:$4 sm:$0xff]  }
 0x184   :  { %2027 = vmatmul.mubr.bf16.vlgmr.msra.gmra.mrb[0].mxu0 %v1206_v32  ;;  %v2559_v32 = vld [vmem:[#allocation8 + $0x1d0] ss:$8 sps:$4 sm:$0xff]  }
 0x185   :  { %2038 = vmatpush1.bf16.msra.mxu0 %v2520_v34 }
 0x186   :  { %2039 = vmatprep.subr.bf16.mxu0 %v2525_v35  ;;  %v2562_v35 = vld [vmem:[#allocation8 + $0x1e0] ss:$8 sps:$4 sm:$0xff]  }
 0x189   :  { %2040 = vmatpush1.bf16.msra.mxu0 %v2523_v36 }
 0x18a   :  { %2041 = vmatprep.subr.bf16.mxu0 %v2528_v37  ;;  %v2567_v37 = vld [vmem:[#allocation8 + $0x1f4] ss:$8 sps:$4 sm:$0xff]  }
 0x18d   :  { %2042 = vmatpush1.bf16.msra.mxu0 %v2526_v38 }
 0x18e   :  { %2043 = vmatprep.subr.bf16.mxu0 %v2531_v39 }
 0x191   :  { %2044 = vmatpush1.bf16.msra.mxu0 %v2529_v40 }
 0x192   :  { %2045 = vmatprep.subr.bf16.mxu0 %v2534_v41 }
 0x195   :  { %2046 = vmatpush1.bf16.msra.mxu0 %v2532_v42 }
 0x196   :  { %2047 = vmatprep.subr.bf16.mxu0 %v2537_v43 }
 0x199   :  { %2048 = vmatpush1.bf16.msra.mxu0 %v2535_v44 }
 0x19a   :  { %2049 = vmatprep.subr.bf16.mxu0 %v2540_v45  ;;  %v2565_v45 = vld [vmem:[#allocation8 + $0x1f0] ss:$8 sps:$4 sm:$0xff]  }
 0x19d   :  { %2050 = vmatpush1.bf16.msra.mxu0 %v2538_v50 }
 0x19e   :  { %2051 = vmatprep.subr.bf16.mxu0 %v2543_v51 }
 0x1a1   :  { %2052 = vmatpush1.bf16.msra.mxu0 %v2541_v10 }
 0x1a2   :  { %v967_v58 = vpop.f32.mrb[4].mxu1  ;;  %2053 = vmatprep.subr.bf16.mxu0 %v2546_v54  ;;  %v2570_v54 = vld [vmem:[#allocation8 + $0x204] ss:$8 sps:$4 sm:$0xff]  }
 0x1a3   :  { %v968_v60 = vadd.f32 %v967_v58, %v221_v55  ;;  %v969_v61 = vpop.f32.mrb[5].mxu1 }
 0x1a4   :  { %v2941_v62 = vadd.f32 %v969_v61, %v225_v56  ;;  %v971_v63 = vpop.f32.mrb[6].mxu1  ;;  %v2571_v61 = vld [vmem:[#allocation8 + $0x210] ss:$8 sps:$4 sm:$0xff]  }
 0x1a5   :  { %v1080_v0 = vmul.f32 %v968_v60, %v968_v60  ;;  %v972_v1 = vadd.f32 %v971_v63, %v221_v55  ;;  %v973_v20 = vpop.f32.mrb[7].mxu1  ;;  %2054 = vmatpush1.bf16.msra.mxu0 %v2544_v57  ;;  %v1064_v42 = vmul.f32 0.5, %v968_v60  ;;  %v2574_v63 = vld [vmem:[#allocation8 + $0x220] ss:$8 sps:$4 sm:$0xff]  }
 0x1a6   :  { %v1081_v3 = vmul.f32 %v2941_v62, %v2941_v62  ;;  %v974_v4 = vadd.f32 %v973_v20, %v225_v56  ;;  %2055 = vmatprep.subr.bf16.mxu0 %v2549_v59  ;;  %v1065_v50 = vmul.f32 0.5, %v2941_v62  ;;  %v2568_v59 = vld [vmem:[#allocation8 + $0x200] ss:$8 sps:$4 sm:$0xff]   ;;  %v2582_v20 = vld [vmem:[#allocation8 + $0x244] ss:$8 sps:$4 sm:$0xff]  }
 0x1a7   :  { %v1096_v6 = vmul.f32 %v1080_v0, %v968_v60  ;;  %v1088_v7 = vmul.f32 %v972_v1, %v972_v1  ;;  %v1072_v43 = vmul.f32 0.5, %v972_v1  ;;  %v2579_v0 = vld [vmem:[#allocation8 + $0x234] ss:$8 sps:$4 sm:$0xff]  }
 0x1a8   :  { %v1097_v8 = vmul.f32 %v1081_v3, %v2941_v62  ;;  %v1089_v9 = vmul.f32 %v974_v4, %v974_v4  ;;  %v1073_v51 = vmul.f32 0.5, %v974_v4  ;;  %v2585_v3 = vld [vmem:[#allocation8 + $0x254] ss:$8 sps:$4 sm:$0xff]  }
 0x1a9   :  { %v1112_v11 = vmul.f32 0.044715, %v1096_v6  ;;  %v1104_v12 = vmul.f32 %v1088_v7, %v972_v1  ;;  %2056 = vmatpush1.bf16.msra.mxu0 %v2547_v2  ;;  %v2580_v2 = vld [vmem:[#allocation8 + $0x240] ss:$8 sps:$4 sm:$0xff]   ;;  %v2591_v7 = vld [vmem:[#allocation8 + $0x274] ss:$8 sps:$4 sm:$0xff]  }
 0x1aa   :  { %v1113_v14 = vmul.f32 0.044715, %v1097_v8  ;;  %v1105_v15 = vmul.f32 %v1089_v9, %v974_v4  ;;  %2057 = vmatprep.subr.bf16.mxu0 %v2552_v5  ;;  %v2588_v5 = vld [vmem:[#allocation8 + $0x264] ss:$8 sps:$4 sm:$0xff]   ;;  %v2586_v6 = vld [vmem:[#allocation8 + $0x260] ss:$8 sps:$4 sm:$0xff]  }
 0x1ab   :  { %v1128_v17 = vadd.f32 %v1112_v11, %v968_v60  ;;  %v1120_v18 = vmul.f32 0.044715, %v1104_v12  ;;  %v2573_v60 = vld [vmem:[#allocation8 + $0x214] ss:$8 sps:$4 sm:$0xff]   ;;  %v228_v8 = vsub.s32 4, %v2925_v46  ;;  %v232_v9 = vsub.s32 5, %v2925_v46 }
 0x1ac   :  { %v1129_v19 = vadd.f32 %v1113_v14, %v2941_v62  ;;  %v1121_v21 = vmul.f32 0.044715, %v1105_v15  ;;  %v2576_v62 = vld [vmem:[#allocation8 + $0x224] ss:$8 sps:$4 sm:$0xff]   ;;  %v2589_v11 = vld [vmem:[#allocation8 + $0x270] ss:$8 sps:$4 sm:$0xff]  }
 0x1ad   :  { %v1144_v22 = vmul.f32 0.7978846, %v1128_v17  ;;  %v1136_v23 = vadd.f32 %v1120_v18, %v972_v1  ;;  %2058 = vmatpush1.bf16.msra.mxu0 %v2550_v13  ;;  %v2577_v1 = vld [vmem:[#allocation8 + $0x230] ss:$8 sps:$4 sm:$0xff]   ;;  %v2594_v12 = vld [vmem:[#allocation8 + $0x284] ss:$8 sps:$4 sm:$0xff]   ;;  %v229_v13 = vrot.slane %v2928_v48, %v228_v8  ;;  %v233_v14 = vrot.slane %v2928_v48, %v232_v9 }
 0x1ae   :  { %v1145_v25 = vmul.f32 0.7978846, %v1129_v19  ;;  %v1137_v26 = vadd.f32 %v1121_v21, %v974_v4  ;;  %2059 = vmatprep.subr.bf16.mxu0 %v2555_v16  ;;  %v2583_v4 = vld [vmem:[#allocation8 + $0x250] ss:$8 sps:$4 sm:$0xff]   ;;  %v2592_v15 = vld [vmem:[#allocation8 + $0x280] ss:$8 sps:$4 sm:$0xff]  }
 0x1af   :  { %2672 = vtanh.f32 %v1144_v22  ;;  %v1152_v28 = vmul.f32 0.7978846, %v1136_v23  ;;  %v2597_v17 = vld [vmem:[#allocation8 + $0x294] ss:$8 sps:$4 sm:$0xff]  }
 0x1b0   :  { %2674 = vtanh.f32 %v1145_v25  ;;  %v1153_v29 = vmul.f32 0.7978846, %v1137_v26  ;;  %v2595_v26 = vld [vmem:[#allocation8 + $0x290] ss:$8 sps:$4 sm:$0xff]  }
 0x1b1   :  { %2676 = vtanh.f32 %v1152_v28  ;;  %2060 = vmatpush1.bf16.msra.mxu0 %v2553_v24 }
 0x1b2   :  { %2678 = vtanh.f32 %v1153_v29  ;;  %2061 = vmatprep.subr.bf16.mxu0 %v2558_v27  ;;  %v2600_v29 = vld [vmem:[#allocation8 + $0x2a4] ss:$8 sps:$4 sm:$0xff]  }
 0x1b5   :  { %2062 = vmatpush1.bf16.msra.mxu0 %v2556_v30 }
 0x1b6   :  { %2063 = vmatprep.subr.bf16.mxu0 %v2561_v31 }
 0x1b9   :  { %v2673_v34 = vpop.eup %2672  ;;  %2064 = vmatpush1.bf16.msra.mxu0 %v2559_v32 }
 0x1ba   :  { %v2675_v36 = vpop.eup %2674  ;;  %2065 = vmatprep.subr.bf16.mxu0 %v2564_v33  ;;  %v1176_v38 = vadd.f32 1.0, %v2673_v34 }
 0x1bb   :  { %v2677_v39 = vpop.eup %2676  ;;  %v1177_v40 = vadd.f32 1.0, %v2675_v36  ;;  %v2598_v36 = vld [vmem:[#allocation8 + $0x2a0] ss:$8 sps:$4 sm:$0xff]  }
 0x1bc   :  { %v2679_v41 = vpop.eup %2678  ;;  %v1184_v44 = vadd.f32 1.0, %v2677_v39  ;;  %v1192_v53 = vmul.f32 %v1176_v38, %v1064_v42  ;;  %v2603_v39 = vld [vmem:[#allocation8 + $0x2b4] ss:$8 sps:$4 sm:$0xff]  }
 0x1bd   :  { %2066 = vmatpush1.bf16.msra.mxu0 %v2562_v35  ;;  %v1185_v52 = vadd.f32 1.0, %v2679_v41  ;;  %v1193_v55 = vmul.f32 %v1177_v40, %v1065_v50  ;;  %v2601_v50 = vld [vmem:[#allocation8 + $0x2b0] ss:$8 sps:$4 sm:$0xff]  }
 0x1be   :  { %2067 = vmatprep.subr.bf16.mxu0 %v2567_v37  ;;  %v1200_v10 = vmul.f32 %v1184_v44, %v1072_v43 }
 0x1bf   :  { %v1201_v56 = vmul.f32 %v1185_v52, %v1073_v51 }
 0x1c0   :  { %v1208_v57 = vpack.c.bf16 %v1200_v10, %v1192_v53  ;;  %v2606_v53 = vld [vmem:[#allocation8 + $0x2c4] ss:$8 sps:$4 sm:$0xff]  }
 0x1c1   :  { %2068 = vmatpush1.bf16.msra.mxu0 %v2565_v45  ;;  %v1209_v58 = vpack.c.bf16 %v1201_v56, %v1193_v55  ;;  %v2604_v55 = vld [vmem:[#allocation8 + $0x2c0] ss:$8 sps:$4 sm:$0xff]   ;;  %v2609_v56 = vld [vmem:[#allocation8 + $0x2d4] ss:$8 sps:$4 sm:$0xff]  }
 0x1c2   :  { %2080 = vmatprep.subr.bf16.mxu0 %v2570_v54 }
 0x1c3   :  { %2069 = vmatprep.mubr.bf16.mxu0 %v1209_v58  ;;  %v2612_v58 = vld [vmem:[#allocation8 + $0x2e4] ss:$8 sps:$4 sm:$0xff]  }
 0x1c4   :  { %2070 = vmatmul.mubr.bf16.vlgmr.msra.gmra.mrb[0].mxu0 %v1208_v57  ;;  %v2607_v57 = vld [vmem:[#allocation8 + $0x2d0] ss:$8 sps:$4 sm:$0xff]  }
 0x1c5   :  { %2081 = vmatpush1.bf16.msra.mxu0 %v2568_v59 }
 0x1c6   :  { %2082 = vmatprep.subr.bf16.mxu0 %v2573_v60  ;;  %v2610_v60 = vld [vmem:[#allocation8 + $0x2e0] ss:$8 sps:$4 sm:$0xff]  }
 0x1c9   :  { %2083 = vmatpush1.bf16.msra.mxu0 %v2571_v61 }
 0x1ca   :  { %2084 = vmatprep.subr.bf16.mxu0 %v2576_v62  ;;  %v2615_v62 = vld [vmem:[#allocation8 + $0x2f4] ss:$8 sps:$4 sm:$0xff]  }
 0x1cd   :  { %2085 = vmatpush1.bf16.msra.mxu0 %v2574_v63 }
 0x1ce   :  { %2086 = vmatprep.subr.bf16.mxu0 %v2579_v0 }
 0x1d1   :  { %2087 = vmatpush1.bf16.msra.mxu0 %v2577_v1 }
 0x1d2   :  { %2088 = vmatprep.subr.bf16.mxu0 %v2582_v20 }
 0x1d5   :  { %2089 = vmatpush1.bf16.msra.mxu0 %v2580_v2 }
 0x1d6   :  { %2090 = vmatprep.subr.bf16.mxu0 %v2585_v3 }
 0x1d9   :  { %2091 = vmatpush1.bf16.msra.mxu0 %v2583_v4 }
 0x1da   :  { %2092 = vmatprep.subr.bf16.mxu0 %v2588_v5  ;;  %v2613_v5 = vld [vmem:[#allocation8 + $0x2f0] ss:$8 sps:$4 sm:$0xff]  }
 0x1dd   :  { %2093 = vmatpush1.bf16.msra.mxu0 %v2586_v6 }
 0x1de   :  { %2094 = vmatprep.subr.bf16.mxu0 %v2591_v7 }
 0x1e1   :  { %2095 = vmatpush1.bf16.msra.mxu0 %v2589_v11 }
 0x1e2   :  { %v1010_v16 = vpop.f32.mrb[8].mxu1  ;;  %2096 = vmatprep.subr.bf16.mxu0 %v2594_v12  ;;  %v2618_v12 = vld [vmem:[#allocation8 + $0x304] ss:$8 sps:$4 sm:$0xff]  }
 0x1e3   :  { %v1011_v18 = vadd.f32 %v1010_v16, %v229_v13  ;;  %v1012_v19 = vpop.f32.mrb[9].mxu1 }
 0x1e4   :  { %v2952_v21 = vadd.f32 %v1012_v19, %v233_v14  ;;  %v1014_v22 = vpop.f32.mrb[10].mxu1  ;;  %v2619_v19 = vld [vmem:[#allocation8 + $0x310] ss:$8 sps:$4 sm:$0xff]  }
 0x1e5   :  { %v1082_v23 = vmul.f32 %v1011_v18, %v1011_v18  ;;  %v1015_v24 = vadd.f32 %v1014_v22, %v229_v13  ;;  %v1016_v25 = vpop.f32.mrb[11].mxu1  ;;  %2097 = vmatpush1.bf16.msra.mxu0 %v2592_v15  ;;  %v1066_v2 = vmul.f32 0.5, %v1011_v18  ;;  %v2622_v22 = vld [vmem:[#allocation8 + $0x320] ss:$8 sps:$4 sm:$0xff]  }
 0x1e6   :  { %v1083_v27 = vmul.f32 %v2952_v21, %v2952_v21  ;;  %v1017_v28 = vadd.f32 %v1016_v25, %v233_v14  ;;  %2098 = vmatprep.subr.bf16.mxu0 %v2597_v17  ;;  %v1067_v6 = vmul.f32 0.5, %v2952_v21  ;;  %v2616_v17 = vld [vmem:[#allocation8 + $0x300] ss:$8 sps:$4 sm:$0xff]   ;;  %v2630_v25 = vld [vmem:[#allocation8 + $0x344] ss:$8 sps:$4 sm:$0xff]  }
 0x1e7   :  { %v1098_v30 = vmul.f32 %v1082_v23, %v1011_v18  ;;  %v1090_v31 = vmul.f32 %v1015_v24, %v1015_v24  ;;  %v1074_v3 = vmul.f32 0.5, %v1015_v24  ;;  %v2627_v23 = vld [vmem:[#allocation8 + $0x334] ss:$8 sps:$4 sm:$0xff]  }
 0x1e8   :  { %v1099_v32 = vmul.f32 %v1083_v27, %v2952_v21  ;;  %v1091_v33 = vmul.f32 %v1017_v28, %v1017_v28  ;;  %v1075_v7 = vmul.f32 0.5, %v1017_v28  ;;  %v2633_v27 = vld [vmem:[#allocation8 + $0x354] ss:$8 sps:$4 sm:$0xff]  }
 0x1e9   :  { %v1114_v34 = vmul.f32 0.044715, %v1098_v30  ;;  %v1106_v35 = vmul.f32 %v1090_v31, %v1015_v24  ;;  %2099 = vmatpush1.bf16.msra.mxu0 %v2595_v26  ;;  %v2628_v26 = vld [vmem:[#allocation8 + $0x340] ss:$8 sps:$4 sm:$0xff]   ;;  %v2639_v31 = vld [vmem:[#allocation8 + $0x374] ss:$8 sps:$4 sm:$0xff]  }
 0x1ea   :  { %v1115_v37 = vmul.f32 0.044715, %v1099_v32  ;;  %v1107_v38 = vmul.f32 %v1091_v33, %v1017_v28  ;;  %2100 = vmatprep.subr.bf16.mxu0 %v2600_v29  ;;  %v2636_v29 = vld [vmem:[#allocation8 + $0x364] ss:$8 sps:$4 sm:$0xff]   ;;  %v2634_v30 = vld [vmem:[#allocation8 + $0x360] ss:$8 sps:$4 sm:$0xff]  }
 0x1eb   :  { %v1130_v40 = vadd.f32 %v1114_v34, %v1011_v18  ;;  %v1122_v41 = vmul.f32 0.044715, %v1106_v35  ;;  %v2621_v18 = vld [vmem:[#allocation8 + $0x314] ss:$8 sps:$4 sm:$0xff]   ;;  %v236_v32 = vsub.s32 6, %v2925_v46  ;;  %v240_v33 = vsub.s32 7, %v2925_v46 }
 0x1ec   :  { %v1131_v42 = vadd.f32 %v1115_v37, %v2952_v21  ;;  %v1123_v43 = vmul.f32 0.044715, %v1107_v38  ;;  %v2624_v21 = vld [vmem:[#allocation8 + $0x324] ss:$8 sps:$4 sm:$0xff]   ;;  %v2637_v34 = vld [vmem:[#allocation8 + $0x370] ss:$8 sps:$4 sm:$0xff]  }
 0x1ed   :  { %v1146_v44 = vmul.f32 0.7978846, %v1130_v40  ;;  %v1138_v45 = vadd.f32 %v1122_v41, %v1015_v24  ;;  %2101 = vmatpush1.bf16.msra.mxu0 %v2598_v36  ;;  %v2625_v24 = vld [vmem:[#allocation8 + $0x330] ss:$8 sps:$4 sm:$0xff]   ;;  %v2642_v35 = vld [vmem:[#allocation8 + $0x384] ss:$8 sps:$4 sm:$0xff]   ;;  %v237_v36 = vrot.slane %v2928_v48, %v236_v32  ;;  %v241_v37 = vrot.slane %v2928_v48, %v240_v33 }
 0x1ee   :  { %v1147_v51 = vmul.f32 0.7978846, %v1131_v42  ;;  %v1139_v52 = vadd.f32 %v1123_v43, %v1017_v28  ;;  %2102 = vmatprep.subr.bf16.mxu0 %v2603_v39  ;;  %v2631_v28 = vld [vmem:[#allocation8 + $0x350] ss:$8 sps:$4 sm:$0xff]   ;;  %v2640_v38 = vld [vmem:[#allocation8 + $0x380] ss:$8 sps:$4 sm:$0xff]  }
 0x1ef   :  { %2680 = vtanh.f32 %v1146_v44  ;;  %v1154_v10 = vmul.f32 0.7978846, %v1138_v45  ;;  %v2645_v40 = vld [vmem:[#allocation8 + $0x394] ss:$8 sps:$4 sm:$0xff]   ;;  %v2648_v48 = vld [vmem:[#allocation8 + $0x3a4] ss:$8 sps:$4 sm:$0xff]  }
 0x1f0   :  { %2682 = vtanh.f32 %v1147_v51  ;;  %v1155_v54 = vmul.f32 0.7978846, %v1139_v52  ;;  %v2643_v52 = vld [vmem:[#allocation8 + $0x390] ss:$8 sps:$4 sm:$0xff]  }
 0x1f1   :  { %2684 = vtanh.f32 %v1154_v10  ;;  %2103 = vmatpush1.bf16.msra.mxu0 %v2601_v50 }
 0x1f2   :  { %2686 = vtanh.f32 %v1155_v54  ;;  %2104 = vmatprep.subr.bf16.mxu0 %v2606_v53 }
 0x1f5   :  { %2105 = vmatpush1.bf16.msra.mxu0 %v2604_v55 }
 0x1f6   :  { %2106 = vmatprep.subr.bf16.mxu0 %v2609_v56 }
 0x1f9   :  { %v2681_v59 = vpop.eup %2680  ;;  %2107 = vmatpush1.bf16.msra.mxu0 %v2607_v57 }
 0x1fa   :  { %v2683_v61 = vpop.eup %2682  ;;  %2108 = vmatprep.subr.bf16.mxu0 %v2612_v58  ;;  %v1178_v63 = vadd.f32 1.0, %v2681_v59 }
 0x1fb   :  { %v2685_v0 = vpop.eup %2684  ;;  %v1179_v1 = vadd.f32 1.0, %v2683_v61 }
 0x1fc   :  { %v2687_v20 = vpop.eup %2686  ;;  %v1186_v4 = vadd.f32 1.0, %v2685_v0  ;;  %v1194_v9 = vmul.f32 %v1178_v63, %v1066_v2  ;;  %v2651_v63 = vld [vmem:[#allocation8 + $0x3b4] ss:$8 sps:$4 sm:$0xff]  }
 0x1fd   :  { %2109 = vmatpush1.bf16.msra.mxu0 %v2610_v60  ;;  %v1187_v8 = vadd.f32 1.0, %v2687_v20  ;;  %v1195_v13 = vmul.f32 %v1179_v1, %v1067_v6  ;;  %v2646_v60 = vld [vmem:[#allocation8 + $0x3a0] ss:$8 sps:$4 sm:$0xff]  }
 0x1fe   :  { %2110 = vmatprep.subr.bf16.mxu0 %v2615_v62  ;;  %v1202_v11 = vmul.f32 %v1186_v4, %v1074_v3 }
 0x1ff   :  { %v1203_v14 = vmul.f32 %v1187_v8, %v1075_v7  ;;  %v2654_v8 = vld [vmem:[#allocation8 + $0x3c4] ss:$8 sps:$4 sm:$0xff]  }
 0x200   :  { %v1210_v15 = vpack.c.bf16 %v1202_v11, %v1194_v9 }
 0x201   :  { %2111 = vmatpush1.bf16.msra.mxu0 %v2613_v5  ;;  %v1211_v16 = vpack.c.bf16 %v1203_v14, %v1195_v13  ;;  %v2649_v5 = vld [vmem:[#allocation8 + $0x3b0] ss:$8 sps:$4 sm:$0xff]   ;;  %v2657_v13 = vld [vmem:[#allocation8 + $0x3d4] ss:$8 sps:$4 sm:$0xff]  }
 0x202   :  { %2123 = vmatprep.subr.bf16.mxu0 %v2618_v12  ;;  %v2652_v12 = vld [vmem:[#allocation8 + $0x3c0] ss:$8 sps:$4 sm:$0xff]   ;;  %v2655_v14 = vld [vmem:[#allocation8 + $0x3d0] ss:$8 sps:$4 sm:$0xff]  }
 0x203   :  { %2112 = vmatprep.mubr.bf16.mxu0 %v1211_v16 }
 0x204   :  { %2113 = vmatmul.mubr.bf16.vlgmr.msra.gmra.mrb[0].mxu0 %v1210_v15  ;;  %v2660_v15 = vld [vmem:[#allocation8 + $0x3e4] ss:$8 sps:$4 sm:$0xff]  }
 0x205   :  { %2124 = vmatpush1.bf16.msra.mxu0 %v2616_v17  ;;  %v2658_v17 = vld [vmem:[#allocation8 + $0x3e0] ss:$8 sps:$4 sm:$0xff]  }
 0x206   :  { %2125 = vmatprep.subr.bf16.mxu0 %v2621_v18 }
 0x209   :  { %2126 = vmatpush1.bf16.msra.mxu0 %v2619_v19  ;;  %v2663_v19 = vld [vmem:[#allocation8 + $0x3f4] ss:$8 sps:$4 sm:$0xff]  }
 0x20a   :  { %2127 = vmatprep.subr.bf16.mxu0 %v2624_v21 }
 0x20d   :  { %2128 = vmatpush1.bf16.msra.mxu0 %v2622_v22 }
 0x20e   :  { %2129 = vmatprep.subr.bf16.mxu0 %v2627_v23 }
 0x211   :  { %2130 = vmatpush1.bf16.msra.mxu0 %v2625_v24 }
 0x212   :  { %2131 = vmatprep.subr.bf16.mxu0 %v2630_v25 }
 0x215   :  { %2132 = vmatpush1.bf16.msra.mxu0 %v2628_v26 }
 0x216   :  { %2133 = vmatprep.subr.bf16.mxu0 %v2633_v27 }
 0x219   :  { %2134 = vmatpush1.bf16.msra.mxu0 %v2631_v28  ;;  %v2661_v28 = vld [vmem:[#allocation8 + $0x3f0] ss:$8 sps:$4 sm:$0xff]  }
 0x21a   :  { %2135 = vmatprep.subr.bf16.mxu0 %v2636_v29 }
 0x21d   :  { %2136 = vmatpush1.bf16.msra.mxu0 %v2634_v30 }
 0x21e   :  { %2137 = vmatprep.subr.bf16.mxu0 %v2639_v31 }
 0x221   :  { %2138 = vmatpush1.bf16.msra.mxu0 %v2637_v34 }
 0x222   :  { %v1053_v39 = vpop.f32.mrb[12].mxu1  ;;  %2139 = vmatprep.subr.bf16.mxu0 %v2642_v35 }
 0x223   :  { %v1054_v41 = vadd.f32 %v1053_v39, %v237_v36  ;;  %v1055_v42 = vpop.f32.mrb[13].mxu1 }
 0x224   :  { %v2963_v43 = vadd.f32 %v1055_v42, %v241_v37  ;;  %v1057_v44 = vpop.f32.mrb[14].mxu1 }
 0x225   :  { %v1084_v45 = vmul.f32 %v1054_v41, %v1054_v41  ;;  %v1058_v50 = vadd.f32 %v1057_v44, %v237_v36  ;;  %v1059_v51 = vpop.f32.mrb[15].mxu1  ;;  %2140 = vmatpush1.bf16.msra.mxu0 %v2640_v38  ;;  %v1068_v25 = vmul.f32 0.5, %v1054_v41  ;;  %v1342_v38 = vld [vmem:[%s2996_s4] sm:$0x3]  ;;  %s2784_s4 = scalar_lea.vmem %s2176_s22, 512 }
 0x226   :  { %v1085_v53 = vmul.f32 %v2963_v43, %v2963_v43  ;;  %v1060_v10 = vadd.f32 %v1059_v51, %v241_v37  ;;  %2141 = vmatprep.subr.bf16.mxu0 %v2645_v40  ;;  %v1069_v29 = vmul.f32 0.5, %v2963_v43  ;;  %v1347_v39 = vrot.slane %v1342_v38, %v212_v47  ;;  %p2785_p4 = scmp.ne.s32.totalorder %s2176_s22, %s2784_s4  ;;  %p2790_p6 = scmp.lt.s32.totalorder %s2784_s4, %s2784_s4 }
 0x227   :  { %v1100_v54 = vmul.f32 %v1084_v45, %v1054_v41  ;;  %v1092_v55 = vmul.f32 %v1058_v50, %v1058_v50  ;;  %v1076_v26 = vmul.f32 0.5, %v1058_v50  ;;  %v1351_v40 = vrot.slane %v1342_v38, %v216_v49 }
 0x228   :  { %v1101_v56 = vmul.f32 %v1085_v53, %v2963_v43  ;;  %v1093_v57 = vmul.f32 %v1060_v10, %v1060_v10  ;;  %v1077_v30 = vmul.f32 0.5, %v1060_v10  ;;  %p2791_p7 = por %p2790_p6, %p2789_p5 }
 0x229   :  { %v1116_v58 = vmul.f32 0.044715, %v1100_v54  ;;  %v1108_v59 = vmul.f32 %v1092_v55, %v1058_v50  ;;  %2142 = vmatpush1.bf16.msra.mxu0 %v2643_v52 }
 0x22a   :  { %v1117_v61 = vmul.f32 0.044715, %v1101_v56  ;;  %v1109_v62 = vmul.f32 %v1093_v57, %v1060_v10  ;;  %2143 = vmatprep.subr.bf16.mxu0 %v2648_v48  ;;  %p2792_p8 = pnand %p2791_p7, %p2785_p4 }
 0x22b   :  { %v1132_v0 = vadd.f32 %v1116_v58, %v1054_v41  ;;  %v1124_v1 = vmul.f32 0.044715, %v1108_v59 }
 0x22c   :  { %v1133_v20 = vadd.f32 %v1117_v61, %v2963_v43  ;;  %v1125_v2 = vmul.f32 0.044715, %v1109_v62 }
 0x22d   :  { %v1148_v3 = vmul.f32 0.7978846, %v1132_v0  ;;  %v1140_v4 = vadd.f32 %v1124_v1, %v1058_v50  ;;  %2144 = vmatpush1.bf16.msra.mxu0 %v2646_v60 }
 0x22e   :  { %v1149_v6 = vmul.f32 0.7978846, %v1133_v20  ;;  %v1141_v7 = vadd.f32 %v1125_v2, %v1060_v10  ;;  %2145 = vmatprep.subr.bf16.mxu0 %v2651_v63 }
 0x22f   :  { %2688 = vtanh.f32 %v1148_v3  ;;  %v1156_v9 = vmul.f32 0.7978846, %v1140_v4 }
 0x230   :  { %2690 = vtanh.f32 %v1149_v6  ;;  %v1157_v11 = vmul.f32 0.7978846, %v1141_v7 }
 0x231   :  { %2692 = vtanh.f32 %v1156_v9  ;;  %2146 = vmatpush1.bf16.msra.mxu0 %v2649_v5 }
 0x232   :  { %2694 = vtanh.f32 %v1157_v11  ;;  %2147 = vmatprep.subr.bf16.mxu0 %v2654_v8 }
 0x235   :  { %2148 = vmatpush1.bf16.msra.mxu0 %v2652_v12 }
 0x236   :  { %2149 = vmatprep.subr.bf16.mxu0 %v2657_v13 }
 0x239   :  { %v2689_v16 = vpop.eup %2688  ;;  %2150 = vmatpush1.bf16.msra.mxu0 %v2655_v14 }
 0x23a   :  { %v2691_v18 = vpop.eup %2690  ;;  %2151 = vmatprep.subr.bf16.mxu0 %v2660_v15  ;;  %v1180_v21 = vadd.f32 1.0, %v2689_v16 }
 0x23b   :  { %v2693_v22 = vpop.eup %2692  ;;  %v1181_v23 = vadd.f32 1.0, %v2691_v18 }
 0x23c   :  { %v2695_v24 = vpop.eup %2694  ;;  %v1188_v27 = vadd.f32 1.0, %v2693_v22  ;;  %v1196_v32 = vmul.f32 %v1180_v21, %v1068_v25 }
 0x23d   :  { %2152 = vmatpush1.bf16.msra.mxu0 %v2658_v17  ;;  %v1189_v31 = vadd.f32 1.0, %v2695_v24  ;;  %v1197_v34 = vmul.f32 %v1181_v23, %v1069_v29 }
 0x23e   :  { %2153 = vmatprep.subr.bf16.mxu0 %v2663_v19  ;;  %v1204_v33 = vmul.f32 %v1188_v27, %v1076_v26 }
 0x23f   :  { %v1205_v35 = vmul.f32 %v1189_v31, %v1077_v30 }
 0x240   :  { %v1212_v36 = vpack.c.bf16 %v1204_v33, %v1196_v32 }
 0x241   :  { %2154 = vmatpush1.bf16.msra.mxu0 %v2661_v28  ;;  %v1213_v37 = vpack.c.bf16 %v1205_v35, %v1197_v34 }
 0x243   :  { %2155 = vmatprep.mubr.bf16.mxu0 %v1213_v37 }
 0x244   :  { %2156 = vmatmul.mubr.bf16.vlgmr.msra.gmra.mrb[0].mxu0 %v1212_v36 }
 0x317   :  { %v2157_v41 = vpop.f32.mrb[0].mxu0 }
 0x318   :  { %v2445_v42 = vadd.f32 %v2157_v41, %v1347_v39  ;;  %v2159_v43 = vpop.f32.mrb[1].mxu0 }
 0x319   :  { %v2446_v44 = vadd.f32 %v2159_v43, %v1351_v40  ;;  %v2161_v45 = vpop.f32.mrb[2].mxu0 }
 0x31a   :  { %2166 = vst [vmem:[#allocation10] sm:$0xff] %v2445_v42  ;;  %v2447_v50 = vadd.f32 %v2161_v45, %v1347_v39  ;;  %v2163_v51 = vpop.f32.mrb[3].mxu0 }
 0x31b   :  { %2167 = vst [vmem:[#allocation10 + $0x8] sm:$0xff] %v2446_v44  ;;  %v2448_v52 = vadd.f32 %v2163_v51, %v1351_v40 }
 0x31c   :  { %2168 = vst [vmem:[#allocation10 + $0x10] sm:$0xff] %v2447_v50 }
 0x31d   :  { %2169 = vst [vmem:[#allocation10 + $0x18] sm:$0xff] %v2448_v52 }
 0x31e   :  { %2795 = shalt.err (!%p2792_p8)
}
 0x31f   :  { %s2796_s25 = scalar_lea.hbm %s2997_s5, 512 }
 0x320   :  { %p2797_p9 = scmp.ne.s32.totalorder %s2997_s5, %s2796_s25  ;;  %p2800_p10 = scmp.lt.u32.totalorder %s2796_s25, %s2997_s5 }
 0x322   :  { %p2802_p11 = pnand %p2800_p10, %p2797_p9 }
 0x324   :  { %2805 = shalt.err (!%p2802_p11)
}
 0x325   :  { %2181 = dma.vmem_to_hbm [thread:$0]  %s2176_s22, 512, %s2997_s5, [#allocation4], %s2818_s1, %s2818_s1, %s2819_s17  }
 0x326   :  { %2812 = dma.done.wait [#allocation4], 512  }
 0x327   :  { %2813 = vsyncadd [#allocation4], 4294966784 }
 0x328   :  { %2185 = vsyncpa [#allocation3], 1 }
 0x329   :  { %2186 = vsyncpa [#allocation6], 1 }
 0x32a   :  { %2187 = vsyncpa [#allocation9], 1 }
 0x32b   :  { %2188 = vsyncpa [#allocation4], 1 }

</bundles_post_ra>
